<compile_context>
chip_gen: v6e
topology: v6e:2x2x1
jax: 0.10.0
libtpu: 0.0.40
codegen_flags: <defaults>
</compile_context>

<pallas_src>
import numpy as np
import jax
import jax.numpy as jnp
from jax.experimental import pallas as pl
from jax.experimental.pallas import tpu as pltpu


# bf16 streams for MXU inputs + conv activations (f32 accumulation / epilogue kept).
# Flip to jnp.float32 for bit-tight comparison against the f32 reference.
MATMUL_INPUT_DTYPE = jnp.bfloat16


# -----------------------------------------------------------------------------
# Pallas kernels
# -----------------------------------------------------------------------------
def conv_bn_relu_pool_kernel(patches_ref, w_ref, bias_ref, out_ref):
    """Fused Conv3x3(pad=1) + BatchNorm(eval, scale folded into w) + MaxPool2x2 + ReLU.

    patches_ref: (1, 9*Cin, 4*L) -- pool-phase im2col, batch folded into lanes,
                 phase-major on the lane axis (phase p occupies lanes [p*L, (p+1)*L)).
    w_ref:       (Cout, 9*Cin)   -- conv weights (tap-major, channel-minor) * BN scale.
    bias_ref:    (Cout, 1)       -- folded BN bias (beta + (b_conv - mean) * scale), f32.
    out_ref:     (1, Cout, L)    -- pooled output, lane-dense (L = B * Hp * Wp).
    """
    L = out_ref.shape[-1]
    # One big MXU matmul: K = 9*Cin (all tap accumulation inside K), N = 4*L.
    z = jnp.dot(w_ref[...], patches_ref[0], preferred_element_type=jnp.float32)
    # 2x2 max-pool == elementwise max over the 4 phases; slices are lane-aligned
    # (L is a multiple of 128 on the lane-dense path).
    p0 = z[:, 0 * L:1 * L]
    p1 = z[:, 1 * L:2 * L]
    p2 = z[:, 2 * L:3 * L]
    p3 = z[:, 3 * L:4 * L]
    pooled = jnp.maximum(jnp.maximum(p0, p1), jnp.maximum(p2, p3))
    # Bias is phase-invariant (max(z+b)=max(z)+b) and ReLU commutes with max: add once.
    out_ref[0] = jnp.maximum(pooled + bias_ref[...], 0.0).astype(out_ref.dtype)


def mlp_kernel(x_ref, w1_ref, b1_ref, w2_ref, b2_ref, out_ref):
    h = jnp.dot(x_ref[...], w1_ref[...], preferred_element_type=jnp.float32)
    h = jnp.maximum(h + b1_ref[...], 0.0).astype(w2_ref.dtype)
    # TODO(synk): Dropout(p=0.5) is treated as inference-mode identity (no RNG).
    out_ref[...] = (jnp.dot(h, w2_ref[...], preferred_element_type=jnp.float32)
                    + b2_ref[...])


# -----------------------------------------------------------------------------
# Glue: batch-chunk picking, patch extraction, pallas_call wrappers
# -----------------------------------------------------------------------------
def _pick_batch_chunk(N, P, lane_target=256):
    """Pick images-per-chunk B so the folded lane width L = B*P is a multiple of 128.

    Preference order: (1) keep >= 2 grid steps (v7x has 2 TensorCores),
    (2) L >= lane_target (fills the 256-wide v6e/v7x MXU), (3) smallest B."""
    dense = [B for B in range(1, N + 1) if N % B == 0 and (B * P) % 128 == 0]
    if not dense:
        return N  # fallback: fold the whole batch (widest lanes we can get)
    return max(dense, key=lambda B: (N // B >= 2, (B * P) >= lane_target, -B))


def extract_pool_phase_patches_folded(x, B):
    """x: (N, C, H, W) -> (N//B, 9*C, 4*B*P), P = (H//2)*(W//2).

    Lane index (within a chunk) = phase*(B*P) + b*P + (i*(W//2)+j), where
    patches[n, (dy*3+dx)*C + c, ...] = x_pad[chunk image b, c, 2i+a+dy, 2j+b'+dx]
    for pool phase (a, b'), i.e. exactly the value conv tap (dy, dx) needs at pool
    phase (a, b') for pooled output pixel (i, j)."""
    N, C, H, W = x.shape
    Hp, Wp = H // 2, W // 2
    P = Hp * Wp
    NC = N // B
    xp = jnp.pad(x, ((0, 0), (0, 0), (1, 1), (1, 1)))
    phases = []
    for a in range(2):
        for b in range(2):
            taps = [xp[:, :, a + dy:a + dy + H:2, b + dx:b + dx + W:2]
                    for dy in range(3) for dx in range(3)]
            ph = jnp.concatenate(taps, axis=1).reshape(NC, B, 9 * C, P)
            # fold batch-within-chunk into lanes: (NC, 9C, B*P)
            phases.append(jnp.transpose(ph, (0, 2, 1, 3)).reshape(NC, 9 * C, B * P))
    return jnp.concatenate(phases, axis=2)   # (NC, 9C, 4*B*P), phase-major on lanes


def conv_bn_relu_pool(x, ws, bias):
    """x: (N, Cin, H, W); ws: (Cout, 9*Cin) scale-folded weights; bias: (Cout,)."""
    N, Cin, H, W = x.shape
    Cout = ws.shape[0]
    Hp, Wp = H // 2, W // 2
    P = Hp * Wp
    B = _pick_batch_chunk(N, P)
    NC = N // B
    L = B * P
    patches = extract_pool_phase_patches_folded(x, B).astype(MATMUL_INPUT_DTYPE)
    out = pl.pallas_call(
        conv_bn_relu_pool_kernel,
        out_shape=jax.ShapeDtypeStruct((NC, Cout, L), MATMUL_INPUT_DTYPE),
        grid=(NC,),
        in_specs=[
            pl.BlockSpec((1, 9 * Cin, 4 * L), lambda n: (n, 0, 0)),
            pl.BlockSpec((Cout, 9 * Cin), lambda n: (0, 0)),    # grid-invariant
            pl.BlockSpec((Cout, 1), lambda n: (0, 0)),          # grid-invariant
        ],
        out_specs=pl.BlockSpec((1, Cout, L), lambda n: (n, 0, 0)),
        compiler_params=pltpu.CompilerParams(dimension_semantics=("parallel",)),
    )(patches, ws.astype(MATMUL_INPUT_DTYPE),
      bias.reshape(-1, 1).astype(jnp.float32))
    # (NC, Cout, B*P) -> (NC, Cout, B, P) -> (NC, B, Cout, P) -> (N, Cout, Hp, Wp)
    return jnp.transpose(out.reshape(NC, Cout, B, P), (0, 2, 1, 3)).reshape(N, Cout, Hp, Wp)


def mlp_head(flat, w1, b1, w2, b2):
    N, F = flat.shape
    H1 = w1.shape[1]
    num_classes = w2.shape[1]
    # M-tile the head over the batch; at tiny N this collapses to one grid step.
    TM = N
    for cand in (256, 128):
        if N > cand and N % cand == 0:
            TM = cand
            break
    return pl.pallas_call(
        mlp_kernel,
        out_shape=jax.ShapeDtypeStruct((N, num_classes), jnp.float32),
        grid=(N // TM,),
        in_specs=[
            pl.BlockSpec((TM, F), lambda i: (i, 0)),
            pl.BlockSpec((F, H1), lambda i: (0, 0)),            # grid-invariant
            pl.BlockSpec((1, H1), lambda i: (0, 0)),
            pl.BlockSpec((H1, num_classes), lambda i: (0, 0)),
            pl.BlockSpec((1, num_classes), lambda i: (0, 0)),
        ],
        out_specs=pl.BlockSpec((TM, num_classes), lambda i: (i, 0)),
        compiler_params=pltpu.CompilerParams(dimension_semantics=("parallel",)),
    )(flat.astype(MATMUL_INPUT_DTYPE), w1.astype(MATMUL_INPUT_DTYPE),
      b1.reshape(1, -1).astype(jnp.float32), w2.astype(MATMUL_INPUT_DTYPE),
      b2.reshape(1, -1).astype(jnp.float32))


def dcnn_forward(x_nchw, params):
    x = x_nchw                                  # stay channel-major (NCHW) throughout
    for layer in params["conv_layers"]:
        x = conv_bn_relu_pool(x, layer["ws"], layer["bias"])
    # torch.flatten(x, 1) on NCHW -> (N, C*H*W) in (C, H, W) order: direct reshape.
    flat = x.reshape(x.shape[0], -1)
    return mlp_head(flat, params["w1"], params["b1"], params["w2"], params["b2"])


# -----------------------------------------------------------------------------
# Deterministic parameter initialization.  Eval-mode BatchNorm is folded at
# param-prep time: scale into the conv weights, the remaining affine into a
# per-channel bias.  fc1 is built with the actual flattened feature size,
# matching the module's dynamic re-initialization branch.
# -----------------------------------------------------------------------------
def init_params(key, num_classes, input_hw):
    eps = 1e-5
    keys = iter(jax.random.split(key, 32))
    conv_defs = [(3, 16), (16, 32), (32, 64)]
    conv_layers = []
    for cin, cout in conv_defs:
        w = jax.random.normal(next(keys), (cout, cin, 3, 3), jnp.float32) / np.sqrt(cin * 9)
        b = 0.05 * jax.random.normal(next(keys), (cout,), jnp.float32)
        gamma = 1.0 + 0.1 * jax.random.normal(next(keys), (cout,), jnp.float32)
        beta = 0.1 * jax.random.normal(next(keys), (cout,), jnp.float32)
        r_mean = 0.1 * jax.random.normal(next(keys), (cout,), jnp.float32)
        r_var = jax.random.uniform(next(keys), (cout,), jnp.float32, 0.5, 1.5)
        scale = gamma / jnp.sqrt(r_var + eps)
        bias = beta + (b - r_mean) * scale
        # OIHW -> (Cout, dy, dx, Cin) -> (Cout, 9*Cin): column index (dy*3+dx)*Cin + c,
        # matching the tap-major/channel-minor patch ordering.  BN scale folded in.
        w_flat = jnp.transpose(w, (0, 2, 3, 1)).reshape(cout, 9 * cin)
        ws = w_flat * scale[:, None]
        conv_layers.append(dict(ws=ws, bias=bias, w_oihw=w, scale=scale))

    H, W = input_hw
    in_feat = 64 * (H // 8) * (W // 8)
    w1 = jax.random.normal(next(keys), (in_feat, 512), jnp.float32) / np.sqrt(in_feat)
    b1 = 0.05 * jax.random.normal(next(keys), (512,), jnp.float32)
    w2 = jax.random.normal(next(keys), (512, num_classes), jnp.float32) / np.sqrt(512)
    b2 = 0.05 * jax.random.normal(next(keys), (num_classes,), jnp.float32)
    return dict(conv_layers=conv_layers, w1=w1, b1=b1, w2=w2, b2=b2)


# -----------------------------------------------------------------------------
# Pure-JAX reference (standard XLA ops, f32, same math) for a sanity check.
# -----------------------------------------------------------------------------
def ref_forward(x_nchw, params):
    x = x_nchw
    for layer in params["conv_layers"]:
        y = jax.lax.conv_general_dilated(
            x, layer["w_oihw"], window_strides=(1, 1), padding="SAME",
            dimension_numbers=("NCHW", "OIHW", "NCHW"),
            precision=jax.lax.Precision.HIGHEST)
        y = y * layer["scale"][None, :, None, None] + layer["bias"][None, :, None, None]
        y = jnp.maximum(y, 0.0)
        N, C, H, W = y.shape
        x = y.reshape(N, C, H // 2, 2, W // 2, 2).max(axis=(3, 5))
    flat = x.reshape(x.shape[0], -1)
    h = jnp.maximum(
        jnp.dot(flat, params["w1"], precision=jax.lax.Precision.HIGHEST) + params["b1"], 0.0)
    return jnp.dot(h, params["w2"], precision=jax.lax.Precision.HIGHEST) + params["b2"]


if __name__ == "__main__":
    num_classes = 10
    # N=8 keeps shapes small while letting every conv stage fold the batch into a
    # lane-dense (multiple-of-128) width: layer1 L=256 (8 chunks), layer2 L=256
    # (2 chunks), layer3 L=128 (1 chunk).  fc1 in_features = 64*4*4 = 1024.
    N, C, H, W = 8, 3, 32, 32

    key = jax.random.PRNGKey(0)
    kx, kp = jax.random.split(key)
    x = jax.random.normal(kx, (N, C, H, W), jnp.float32)
    params = init_params(kp, num_classes, (H, W))

    out = jax.jit(dcnn_forward)(x, params)
    out = jax.block_until_ready(out)

    ref = jax.block_until_ready(ref_forward(x, params))
    assert out.shape == (N, num_classes)
    max_err = float(jnp.max(jnp.abs(out - ref.astype(jnp.float32))))
    # bf16 MXU inputs vs. f32 reference -> looser tolerance (f32 path stays tight).
    tol = 2e-2 if MATMUL_INPUT_DTYPE == jnp.float32 else 2.5e-1
    assert max_err < tol, f"mismatch vs reference: {max_err}"

    print("KERNEL_OK")
</pallas_src>

<mosaic_0001>
module attributes {stable_mosaic.version = 11 : i64} {
  func.func @conv_bn_relu_pool_kernel(%arg0: i32, %arg1: memref<1x27x1024xbf16, #tpu.memory_space<vmem>>, %arg2: memref<16x27xbf16, #tpu.memory_space<vmem>>, %arg3: memref<16x1xf32, #tpu.memory_space<vmem>>, %arg4: memref<1x16x256xbf16, #tpu.memory_space<vmem>>) attributes {dimension_semantics = [#tpu.dimension_semantics<parallel>], iteration_bounds = array<i64: 8>, scalar_prefetch = 0 : i64, scratch_operands = 0 : i64, tpu.core_type = #tpu.core_type<tc>, window_params = [{transform_indices = @transform_0, window_bounds = array<i64: 1, 27, 1024>}, {pipeline_mode = #tpu.pipeline_mode<synchronous>, transform_indices = @transform_1, window_bounds = array<i64: 16, 27>}, {pipeline_mode = #tpu.pipeline_mode<synchronous>, transform_indices = @transform_2, window_bounds = array<i64: 16, 1>}, {transform_indices = @transform_3, window_bounds = array<i64: 1, 16, 256>}]} {
    %c0 = arith.constant 0 : index
    %c0_0 = arith.constant 0 : index
    %0 = vector.load %arg2[%c0, %c0_0] : memref<16x27xbf16, #tpu.memory_space<vmem>>, vector<16x27xbf16>
    %c0_1 = arith.constant 0 : index
    %c0_2 = arith.constant 0 : index
    %c0_3 = arith.constant 0 : index
    %1 = vector.load %arg1[%c0_1, %c0_2, %c0_3] : memref<1x27x1024xbf16, #tpu.memory_space<vmem>>, vector<1x27x1024xbf16>
    %2 = vector.shape_cast %1 : vector<1x27x1024xbf16> to vector<27x1024xbf16>
    %cst = arith.constant dense<0.000000e+00> : vector<16x1024xf32>
    %3 = tpu.matmul %0, %2, %cst {dimension_numbers = #tpu.dot_dimension_numbers<[1], [0], [0], [1], [0, 0, 1, 1], [], []>} : vector<16x27xbf16>, vector<27x1024xbf16>, vector<16x1024xf32> -> vector<16x1024xf32>
    %4 = vector.extract_strided_slice %3 {offsets = [0, 0], sizes = [16, 256], strides = [1, 1]} : vector<16x1024xf32> to vector<16x256xf32>
    %5 = vector.extract_strided_slice %3 {offsets = [0, 256], sizes = [16, 256], strides = [1, 1]} : vector<16x1024xf32> to vector<16x256xf32>
    %6 = vector.extract_strided_slice %3 {offsets = [0, 512], sizes = [16, 256], strides = [1, 1]} : vector<16x1024xf32> to vector<16x256xf32>
    %7 = vector.extract_strided_slice %3 {offsets = [0, 768], sizes = [16, 256], strides = [1, 1]} : vector<16x1024xf32> to vector<16x256xf32>
    %8 = arith.maximumf %4, %5 : vector<16x256xf32>
    %9 = arith.maximumf %6, %7 : vector<16x256xf32>
    %10 = arith.maximumf %8, %9 : vector<16x256xf32>
    %c0_4 = arith.constant 0 : index
    %c0_5 = arith.constant 0 : index
    %11 = vector.load %arg3[%c0_4, %c0_5] : memref<16x1xf32, #tpu.memory_space<vmem>>, vector<16x1xf32>
    %12 = vector.broadcast %11 : vector<16x1xf32> to vector<16x256xf32>
    %13 = arith.addf %10, %12 : vector<16x256xf32>
    %cst_6 = arith.constant 0.000000e+00 : f32
    %14 = vector.broadcast %cst_6 : f32 to vector<16x256xf32>
    %15 = arith.maximumf %13, %14 : vector<16x256xf32>
    %16 = arith.truncf %15 : vector<16x256xf32> to vector<16x256xbf16>
    %c0_7 = arith.constant 0 : index
    %c0_8 = arith.constant 0 : index
    %c0_9 = arith.constant 0 : index
    %17 = vector.load %arg4[%c0_7, %c0_8, %c0_9] : memref<1x16x256xbf16, #tpu.memory_space<vmem>>, vector<1x16x256xbf16>
    %18 = vector.shape_cast %17 : vector<1x16x256xbf16> to vector<16x256xbf16>
    %19 = vector.shape_cast %16 : vector<16x256xbf16> to vector<1x16x256xbf16>
    tpu.vector_store %arg4[%c0_7, %c0_8, %c0_9], %19 {strides = array<i32>} : memref<1x16x256xbf16, #tpu.memory_space<vmem>>, vector<1x16x256xbf16>,
    return
  }
  func.func @transform_0(%arg0: i32) -> (i32, i32, i32) {
    %c0_i32 = arith.constant 0 : i32
    %c0_i32_0 = arith.constant 0 : i32
    %c0_i32_1 = arith.constant 0 : i32
    return %arg0, %c0_i32, %c0_i32_0 : i32, i32, i32
  }
  func.func @transform_1(%arg0: i32) -> (i32, i32) {
    %c0_i32 = arith.constant 0 : i32
    %c0_i32_0 = arith.constant 0 : i32
    %c0_i32_1 = arith.constant 0 : i32
    return %c0_i32, %c0_i32_0 : i32, i32
  }
  func.func @transform_2(%arg0: i32) -> (i32, i32) {
    %c0_i32 = arith.constant 0 : i32
    %c0_i32_0 = arith.constant 0 : i32
    %c0_i32_1 = arith.constant 0 : i32
    return %c0_i32, %c0_i32_0 : i32, i32
  }
  func.func @transform_3(%arg0: i32) -> (i32, i32, i32) {
    %c0_i32 = arith.constant 0 : i32
    %c0_i32_0 = arith.constant 0 : i32
    %c0_i32_1 = arith.constant 0 : i32
    return %arg0, %c0_i32, %c0_i32_0 : i32, i32, i32
  }
}

module attributes {stable_mosaic.version = 11 : i64} {
  func.func @conv_bn_relu_pool_kernel(%arg0: i32, %arg1: memref<1x144x1024xbf16, #tpu.memory_space<vmem>>, %arg2: memref<32x144xbf16, #tpu.memory_space<vmem>>, %arg3: memref<32x1xf32, #tpu.memory_space<vmem>>, %arg4: memref<1x32x256xbf16, #tpu.memory_space<vmem>>) attributes {dimension_semantics = [#tpu.dimension_semantics<parallel>], iteration_bounds = array<i64: 2>, scalar_prefetch = 0 : i64, scratch_operands = 0 : i64, tpu.core_type = #tpu.core_type<tc>, window_params = [{transform_indices = @transform_0, window_bounds = array<i64: 1, 144, 1024>}, {pipeline_mode = #tpu.pipeline_mode<synchronous>, transform_indices = @transform_1, window_bounds = array<i64: 32, 144>}, {pipeline_mode = #tpu.pipeline_mode<synchronous>, transform_indices = @transform_2, window_bounds = array<i64: 32, 1>}, {transform_indices = @transform_3, window_bounds = array<i64: 1, 32, 256>}]} {
    %c0 = arith.constant 0 : index
    %c0_0 = arith.constant 0 : index
    %0 = vector.load %arg2[%c0, %c0_0] : memref<32x144xbf16, #tpu.memory_space<vmem>>, vector<32x144xbf16>
    %c0_1 = arith.constant 0 : index
    %c0_2 = arith.constant 0 : index
    %c0_3 = arith.constant 0 : index
    %1 = vector.load %arg1[%c0_1, %c0_2, %c0_3] : memref<1x144x1024xbf16, #tpu.memory_space<vmem>>, vector<1x144x1024xbf16>
    %2 = vector.shape_cast %1 : vector<1x144x1024xbf16> to vector<144x1024xbf16>
    %cst = arith.constant dense<0.000000e+00> : vector<32x1024xf32>
    %3 = tpu.matmul %0, %2, %cst {dimension_numbers = #tpu.dot_dimension_numbers<[1], [0], [0], [1], [0, 0, 1, 1], [], []>} : vector<32x144xbf16>, vector<144x1024xbf16>, vector<32x1024xf32> -> vector<32x1024xf32>
    %4 = vector.extract_strided_slice %3 {offsets = [0, 0], sizes = [32, 256], strides = [1, 1]} : vector<32x1024xf32> to vector<32x256xf32>
    %5 = vector.extract_strided_slice %3 {offsets = [0, 256], sizes = [32, 256], strides = [1, 1]} : vector<32x1024xf32> to vector<32x256xf32>
    %6 = vector.extract_strided_slice %3 {offsets = [0, 512], sizes = [32, 256], strides = [1, 1]} : vector<32x1024xf32> to vector<32x256xf32>
    %7 = vector.extract_strided_slice %3 {offsets = [0, 768], sizes = [32, 256], strides = [1, 1]} : vector<32x1024xf32> to vector<32x256xf32>
    %8 = arith.maximumf %4, %5 : vector<32x256xf32>
    %9 = arith.maximumf %6, %7 : vector<32x256xf32>
    %10 = arith.maximumf %8, %9 : vector<32x256xf32>
    %c0_4 = arith.constant 0 : index
    %c0_5 = arith.constant 0 : index
    %11 = vector.load %arg3[%c0_4, %c0_5] : memref<32x1xf32, #tpu.memory_space<vmem>>, vector<32x1xf32>
    %12 = vector.broadcast %11 : vector<32x1xf32> to vector<32x256xf32>
    %13 = arith.addf %10, %12 : vector<32x256xf32>
    %cst_6 = arith.constant 0.000000e+00 : f32
    %14 = vector.broadcast %cst_6 : f32 to vector<32x256xf32>
    %15 = arith.maximumf %13, %14 : vector<32x256xf32>
    %16 = arith.truncf %15 : vector<32x256xf32> to vector<32x256xbf16>
    %c0_7 = arith.constant 0 : index
    %c0_8 = arith.constant 0 : index
    %c0_9 = arith.constant 0 : index
    %17 = vector.load %arg4[%c0_7, %c0_8, %c0_9] : memref<1x32x256xbf16, #tpu.memory_space<vmem>>, vector<1x32x256xbf16>
    %18 = vector.shape_cast %17 : vector<1x32x256xbf16> to vector<32x256xbf16>
    %19 = vector.shape_cast %16 : vector<32x256xbf16> to vector<1x32x256xbf16>
    tpu.vector_store %arg4[%c0_7, %c0_8, %c0_9], %19 {strides = array<i32>} : memref<1x32x256xbf16, #tpu.memory_space<vmem>>, vector<1x32x256xbf16>,
    return
  }
  func.func @transform_0(%arg0: i32) -> (i32, i32, i32) {
    %c0_i32 = arith.constant 0 : i32
    %c0_i32_0 = arith.constant 0 : i32
    %c0_i32_1 = arith.constant 0 : i32
    return %arg0, %c0_i32, %c0_i32_0 : i32, i32, i32
  }
  func.func @transform_1(%arg0: i32) -> (i32, i32) {
    %c0_i32 = arith.constant 0 : i32
    %c0_i32_0 = arith.constant 0 : i32
    %c0_i32_1 = arith.constant 0 : i32
    return %c0_i32, %c0_i32_0 : i32, i32
  }
  func.func @transform_2(%arg0: i32) -> (i32, i32) {
    %c0_i32 = arith.constant 0 : i32
    %c0_i32_0 = arith.constant 0 : i32
    %c0_i32_1 = arith.constant 0 : i32
    return %c0_i32, %c0_i32_0 : i32, i32
  }
  func.func @transform_3(%arg0: i32) -> (i32, i32, i32) {
    %c0_i32 = arith.constant 0 : i32
    %c0_i32_0 = arith.constant 0 : i32
    %c0_i32_1 = arith.constant 0 : i32
    return %arg0, %c0_i32, %c0_i32_0 : i32, i32, i32
  }
}

module attributes {stable_mosaic.version = 11 : i64} {
  func.func @conv_bn_relu_pool_kernel(%arg0: i32, %arg1: memref<1x288x512xbf16, #tpu.memory_space<vmem>>, %arg2: memref<64x288xbf16, #tpu.memory_space<vmem>>, %arg3: memref<64x1xf32, #tpu.memory_space<vmem>>, %arg4: memref<1x64x128xbf16, #tpu.memory_space<vmem>>) attributes {dimension_semantics = [#tpu.dimension_semantics<parallel>], iteration_bounds = array<i64: 1>, scalar_prefetch = 0 : i64, scratch_operands = 0 : i64, tpu.core_type = #tpu.core_type<tc>, window_params = [{transform_indices = @transform_0, window_bounds = array<i64: 1, 288, 512>}, {pipeline_mode = #tpu.pipeline_mode<synchronous>, transform_indices = @transform_1, window_bounds = array<i64: 64, 288>}, {pipeline_mode = #tpu.pipeline_mode<synchronous>, transform_indices = @transform_2, window_bounds = array<i64: 64, 1>}, {transform_indices = @transform_3, window_bounds = array<i64: 1, 64, 128>}]} {
    %c0 = arith.constant 0 : index
    %c0_0 = arith.constant 0 : index
    %0 = vector.load %arg2[%c0, %c0_0] : memref<64x288xbf16, #tpu.memory_space<vmem>>, vector<64x288xbf16>
    %c0_1 = arith.constant 0 : index
    %c0_2 = arith.constant 0 : index
    %c0_3 = arith.constant 0 : index
    %1 = vector.load %arg1[%c0_1, %c0_2, %c0_3] : memref<1x288x512xbf16, #tpu.memory_space<vmem>>, vector<1x288x512xbf16>
    %2 = vector.shape_cast %1 : vector<1x288x512xbf16> to vector<288x512xbf16>
    %cst = arith.constant dense<0.000000e+00> : vector<64x512xf32>
    %3 = tpu.matmul %0, %2, %cst {dimension_numbers = #tpu.dot_dimension_numbers<[1], [0], [0], [1], [0, 0, 1, 1], [], []>} : vector<64x288xbf16>, vector<288x512xbf16>, vector<64x512xf32> -> vector<64x512xf32>
    %4 = vector.extract_strided_slice %3 {offsets = [0, 0], sizes = [64, 128], strides = [1, 1]} : vector<64x512xf32> to vector<64x128xf32>
    %5 = vector.extract_strided_slice %3 {offsets = [0, 128], sizes = [64, 128], strides = [1, 1]} : vector<64x512xf32> to vector<64x128xf32>
    %6 = vector.extract_strided_slice %3 {offsets = [0, 256], sizes = [64, 128], strides = [1, 1]} : vector<64x512xf32> to vector<64x128xf32>
    %7 = vector.extract_strided_slice %3 {offsets = [0, 384], sizes = [64, 128], strides = [1, 1]} : vector<64x512xf32> to vector<64x128xf32>
    %8 = arith.maximumf %4, %5 : vector<64x128xf32>
    %9 = arith.maximumf %6, %7 : vector<64x128xf32>
    %10 = arith.maximumf %8, %9 : vector<64x128xf32>
    %c0_4 = arith.constant 0 : index
    %c0_5 = arith.constant 0 : index
    %11 = vector.load %arg3[%c0_4, %c0_5] : memref<64x1xf32, #tpu.memory_space<vmem>>, vector<64x1xf32>
    %12 = vector.broadcast %11 : vector<64x1xf32> to vector<64x128xf32>
    %13 = arith.addf %10, %12 : vector<64x128xf32>
    %cst_6 = arith.constant 0.000000e+00 : f32
    %14 = vector.broadcast %cst_6 : f32 to vector<64x128xf32>
    %15 = arith.maximumf %13, %14 : vector<64x128xf32>
    %16 = arith.truncf %15 : vector<64x128xf32> to vector<64x128xbf16>
    %c0_7 = arith.constant 0 : index
    %c0_8 = arith.constant 0 : index
    %c0_9 = arith.constant 0 : index
    %17 = vector.load %arg4[%c0_7, %c0_8, %c0_9] : memref<1x64x128xbf16, #tpu.memory_space<vmem>>, vector<1x64x128xbf16>
    %18 = vector.shape_cast %17 : vector<1x64x128xbf16> to vector<64x128xbf16>
    %19 = vector.shape_cast %16 : vector<64x128xbf16> to vector<1x64x128xbf16>
    tpu.vector_store %arg4[%c0_7, %c0_8, %c0_9], %19 {strides = array<i32>} : memref<1x64x128xbf16, #tpu.memory_space<vmem>>, vector<1x64x128xbf16>,
    return
  }
  func.func @transform_0(%arg0: i32) -> (i32, i32, i32) {
    %c0_i32 = arith.constant 0 : i32
    %c0_i32_0 = arith.constant 0 : i32
    %c0_i32_1 = arith.constant 0 : i32
    return %arg0, %c0_i32, %c0_i32_0 : i32, i32, i32
  }
  func.func @transform_1(%arg0: i32) -> (i32, i32) {
    %c0_i32 = arith.constant 0 : i32
    %c0_i32_0 = arith.constant 0 : i32
    %c0_i32_1 = arith.constant 0 : i32
    return %c0_i32, %c0_i32_0 : i32, i32
  }
  func.func @transform_2(%arg0: i32) -> (i32, i32) {
    %c0_i32 = arith.constant 0 : i32
    %c0_i32_0 = arith.constant 0 : i32
    %c0_i32_1 = arith.constant 0 : i32
    return %c0_i32, %c0_i32_0 : i32, i32
  }
  func.func @transform_3(%arg0: i32) -> (i32, i32, i32) {
    %c0_i32 = arith.constant 0 : i32
    %c0_i32_0 = arith.constant 0 : i32
    %c0_i32_1 = arith.constant 0 : i32
    return %arg0, %c0_i32, %c0_i32_0 : i32, i32, i32
  }
}

module attributes {stable_mosaic.version = 11 : i64} {
  func.func @mlp_kernel(%arg0: i32, %arg1: memref<8x1024xbf16, #tpu.memory_space<vmem>>, %arg2: memref<1024x512xbf16, #tpu.memory_space<vmem>>, %arg3: memref<1x512xf32, #tpu.memory_space<vmem>>, %arg4: memref<512x10xbf16, #tpu.memory_space<vmem>>, %arg5: memref<1x10xf32, #tpu.memory_space<vmem>>, %arg6: memref<8x10xf32, #tpu.memory_space<vmem>>) attributes {dimension_semantics = [#tpu.dimension_semantics<parallel>], iteration_bounds = array<i64: 1>, scalar_prefetch = 0 : i64, scratch_operands = 0 : i64, tpu.core_type = #tpu.core_type<tc>, window_params = [{transform_indices = @transform_0, window_bounds = array<i64: 8, 1024>}, {pipeline_mode = #tpu.pipeline_mode<synchronous>, transform_indices = @transform_1, window_bounds = array<i64: 1024, 512>}, {pipeline_mode = #tpu.pipeline_mode<synchronous>, transform_indices = @transform_2, window_bounds = array<i64: 1, 512>}, {pipeline_mode = #tpu.pipeline_mode<synchronous>, transform_indices = @transform_3, window_bounds = array<i64: 512, 10>}, {pipeline_mode = #tpu.pipeline_mode<synchronous>, transform_indices = @transform_4, window_bounds = array<i64: 1, 10>}, {transform_indices = @transform_5, window_bounds = array<i64: 8, 10>}]} {
    %c0 = arith.constant 0 : index
    %c0_0 = arith.constant 0 : index
    %0 = vector.load %arg1[%c0, %c0_0] : memref<8x1024xbf16, #tpu.memory_space<vmem>>, vector<8x1024xbf16>
    %c0_1 = arith.constant 0 : index
    %c0_2 = arith.constant 0 : index
    %1 = vector.load %arg2[%c0_1, %c0_2] : memref<1024x512xbf16, #tpu.memory_space<vmem>>, vector<1024x512xbf16>
    %cst = arith.constant dense<0.000000e+00> : vector<8x512xf32>
    %2 = tpu.matmul %0, %1, %cst {dimension_numbers = #tpu.dot_dimension_numbers<[1], [0], [0], [1], [0, 0, 1, 1], [], []>} : vector<8x1024xbf16>, vector<1024x512xbf16>, vector<8x512xf32> -> vector<8x512xf32>
    %c0_3 = arith.constant 0 : index
    %c0_4 = arith.constant 0 : index
    %3 = vector.load %arg3[%c0_3, %c0_4] : memref<1x512xf32, #tpu.memory_space<vmem>>, vector<1x512xf32>
    %4 = vector.broadcast %3 : vector<1x512xf32> to vector<8x512xf32>
    %5 = arith.addf %2, %4 : vector<8x512xf32>
    %cst_5 = arith.constant 0.000000e+00 : f32
    %6 = vector.broadcast %cst_5 : f32 to vector<8x512xf32>
    %7 = arith.maximumf %5, %6 : vector<8x512xf32>
    %8 = arith.truncf %7 : vector<8x512xf32> to vector<8x512xbf16>
    %c0_6 = arith.constant 0 : index
    %c0_7 = arith.constant 0 : index
    %9 = vector.load %arg4[%c0_6, %c0_7] : memref<512x10xbf16, #tpu.memory_space<vmem>>, vector<512x10xbf16>
    %cst_8 = arith.constant dense<0.000000e+00> : vector<8x10xf32>
    %10 = tpu.matmul %8, %9, %cst_8 {dimension_numbers = #tpu.dot_dimension_numbers<[1], [0], [0], [1], [0, 0, 1, 1], [], []>} : vector<8x512xbf16>, vector<512x10xbf16>, vector<8x10xf32> -> vector<8x10xf32>
    %c0_9 = arith.constant 0 : index
    %c0_10 = arith.constant 0 : index
    %11 = vector.load %arg5[%c0_9, %c0_10] : memref<1x10xf32, #tpu.memory_space<vmem>>, vector<1x10xf32>
    %12 = vector.broadcast %11 : vector<1x10xf32> to vector<8x10xf32>
    %13 = arith.addf %10, %12 : vector<8x10xf32>
    %c0_11 = arith.constant 0 : index
    %c0_12 = arith.constant 0 : index
    %14 = vector.load %arg6[%c0_11, %c0_12] : memref<8x10xf32, #tpu.memory_space<vmem>>, vector<8x10xf32>
    tpu.vector_store %arg6[%c0_11, %c0_12], %13 {strides = array<i32>} : memref<8x10xf32, #tpu.memory_space<vmem>>, vector<8x10xf32>,
    return
  }
  func.func @transform_0(%arg0: i32) -> (i32, i32) {
    %c0_i32 = arith.constant 0 : i32
    %c0_i32_0 = arith.constant 0 : i32
    return %arg0, %c0_i32 : i32, i32
  }
  func.func @transform_1(%arg0: i32) -> (i32, i32) {
    %c0_i32 = arith.constant 0 : i32
    %c0_i32_0 = arith.constant 0 : i32
    %c0_i32_1 = arith.constant 0 : i32
    return %c0_i32, %c0_i32_0 : i32, i32
  }
  func.func @transform_2(%arg0: i32) -> (i32, i32) {
    %c0_i32 = arith.constant 0 : i32
    %c0_i32_0 = arith.constant 0 : i32
    %c0_i32_1 = arith.constant 0 : i32
    return %c0_i32, %c0_i32_0 : i32, i32
  }
  func.func @transform_3(%arg0: i32) -> (i32, i32) {
    %c0_i32 = arith.constant 0 : i32
    %c0_i32_0 = arith.constant 0 : i32
    %c0_i32_1 = arith.constant 0 : i32
    return %c0_i32, %c0_i32_0 : i32, i32
  }
  func.func @transform_4(%arg0: i32) -> (i32, i32) {
    %c0_i32 = arith.constant 0 : i32
    %c0_i32_0 = arith.constant 0 : i32
    %c0_i32_1 = arith.constant 0 : i32
    return %c0_i32, %c0_i32_0 : i32, i32
  }
  func.func @transform_5(%arg0: i32) -> (i32, i32) {
    %c0_i32 = arith.constant 0 : i32
    %c0_i32_0 = arith.constant 0 : i32
    return %arg0, %c0_i32 : i32, i32
  }
}

</mosaic_0001>

<bundles_post_ra>
// kernel: dcnn_forward.4
= control target key start
LH: loop header
LB: loop body
LE: loop exit
PB: predicated region body
PF: predicated region fallthrough
CT: control target
= control target key end

     0   :  { %s652_s12 = smov 0   ;;  %s709_s0 = inlined_call_operand.vmem [shape: bf16[8,27,1024], index: 0, kind: input, shape index: {}]   ;;  %s710_s1 = inlined_call_operand.vmem [shape: bf16[16,27], index: 1, kind: input, shape index: {}]   ;;  %s711_s2 = inlined_call_operand.vmem [shape: f32[16,1], index: 2, kind: input, shape index: {}]   ;;  %s712_s3 = inlined_call_operand.vmem [shape: bf16[8,16,256], index: 3, kind: output, shape index: {}]  }
   0x1 LB: > { %s572_s13 = sadd.s32 4294967295, %s628_s12   ;;  %p576_p0 = scmp.ge.s32.totalorder %s628_s12, 1  ;;  %s628_s12 = sphi %s652_s12, %s13_s12  }
   0x2   : > { %p137_p1 = scmp.lt.s32.totalorder %s628_s12, 9 }
   0x4   : > { %p138_p2 = pnand %p576_p0, %p137_p1 }
   0x5   : > { %p161_p3 = scmp.lt.s32.totalorder (!%p138_p2), %s572_s13, 7 }
   0x6   : > { %141 = sbr.rel (%p138_p2) target bundleno = 246 (0xf6), region = 32 }
   0xb   : > { %vm271_vm0 = vcmask 1044480   ;;  %v630_v0 = vmov 0   ;;  %s714_s13 = smov (!%p161_p3, %s572_s13), 7  ;;  %v483_v1 = vld [vmem:[%s711_s2] sm:$0xff]  ;;  %vm272_vm1 = vcmask 1045504   ;;  %v631_v2 = vmov 65535  }
   0xc   : > { %331 = vmatprep.mubr.bf16.mxu0 %v630_v0  ;;  %374 = vmatprep.mubr.bf16.mxu1 %v630_v0  ;;  %v273_v3 = vsel %vm271_vm0, 4294967295, %v631_v2  ;;  %s606_s16 = sshll.u32 %s714_s13, 7  ;;  %v484_v4 = vld [vmem:[%s711_s2 + $0x8] sm:$0xff]  ;;  %v621_v38 = vld [vmem:[%s710_s1] sm:$0xff]   ;;  %vm267_vm2 = vcmask 220160   ;;  %s607_s24 = sshll.u32 %s714_s13, 4 }
   0xd   : > { %620 = vset.pattern.permute.xlu0 %v630_v0  ;;  %s675_s21 = scalar_lea.vmem %s709_s0, %s606_s16  ;;  %v274_v7 = vsel %vm272_vm1, %v273_v3, 0  ;;  %s170_s27 = scalar_lea.vmem %s712_s3, %s607_s24 }
   0xe   : > { %487 = vperm.xlu0 %620, %v483_v1   ;;  %v182_v5 = vld [vmem:[%s675_s21 + $0x40] sm:$0xff]  ;;  %v183_v8 = vld [vmem:[%s675_s21 + $0x48] sm:$0xff]  ;;  %v184_v18 = vld [vmem:[%s675_s21 + $0x50] sm:$0xff] }
   0xf   : > { %v186_v6 = vld [vmem:[%s675_s21 + $0x60] sm:$0x33]  ;;  %v187_v10 = vld [vmem:[%s675_s21 + $0x68] sm:$0x33]  ;;  %v188_v22 = vld [vmem:[%s675_s21 + $0x70] sm:$0x33] }
  0x10   : > { %v591_v9 = vcombine.high %v182_v5, %v186_v6  ;;  %v590_v11 = vcombine.low %v182_v5, %v186_v6  ;;  %v174_v12 = vld [vmem:[%s675_s21] sm:$0xff]  ;;  %v593_v14 = vcombine.high %v183_v8, %v187_v10  ;;  %v592_v15 = vcombine.low %v183_v8, %v187_v10  ;;  %v175_v16 = vld [vmem:[%s675_s21 + $0x8] sm:$0xff]  ;;  %v185_v23 = vld [vmem:[%s675_s21 + $0x58] sm:$0xff] }
  0x11   : > { %v178_v13 = vld [vmem:[%s675_s21 + $0x20] sm:$0xff]  ;;  %v179_v17 = vld [vmem:[%s675_s21 + $0x28] sm:$0xff]  ;;  %v189_v24 = vld [vmem:[%s675_s21 + $0x78] sm:$0x33]  ;;  %v595_v28 = vcombine.high %v184_v18, %v188_v22  ;;  %v594_v31 = vcombine.low %v184_v18, %v188_v22 }
  0x12   : > { %492 = vperm.xlu0 %620, %v484_v4   ;;  %v279_v19 = vand.u32 %v591_v9, %v274_v7  ;;  %v276_v20 = vand.u32 %v590_v11, %v274_v7  ;;  %v583_v21 = vcombine.high %v174_v12, %v178_v13  ;;  %v285_v25 = vand.u32 %v593_v14, %v274_v7  ;;  %v176_v36 = vld [vmem:[%s675_s21 + $0x10] sm:$0xff]  ;;  %v177_v39 = vld [vmem:[%s675_s21 + $0x18] sm:$0xff] }
  0x13   : > { %v282_v26 = vand.u32 %v592_v15, %v274_v7  ;;  %v585_v27 = vcombine.high %v175_v16, %v179_v17  ;;  %v597_v29 = vcombine.high %v185_v23, %v189_v24  ;;  %v582_v30 = vcombine.low %v174_v12, %v178_v13  ;;  %v180_v37 = vld [vmem:[%s675_s21 + $0x30] sm:$0xff]  ;;  %v181_v40 = vld [vmem:[%s675_s21 + $0x38] sm:$0xff] }
  0x14   : > { %311 = vmatprep.subr.bf16.mxu0 %v279_v19  ;;  %354 = vmatprep.subr.bf16.mxu1 %v285_v25  ;;  %v584_v32 = vcombine.low %v175_v16, %v179_v17  ;;  %v291_v33 = vand.u32 %v595_v28, %v274_v7  ;;  %v596_v34 = vcombine.low %v185_v23, %v189_v24 }
  0x15   : > { %312 = vmatpush1.bf16.msra.mxu0 %v276_v20  ;;  %355 = vmatpush1.bf16.msra.mxu1 %v282_v26  ;;  %v297_v35 = vand.u32 %v597_v29, %v274_v7  ;;  %v288_v41 = vand.u32 %v594_v31, %v274_v7  ;;  %v587_v43 = vcombine.high %v176_v36, %v180_v37 }
  0x16   : > { %313 = vmatprep.subr.bf16.mxu0 %v583_v21  ;;  %356 = vmatprep.subr.bf16.mxu1 %v585_v27  ;;  %v294_v42 = vand.u32 %v596_v34, %v274_v7  ;;  %v589_v44 = vcombine.high %v177_v39, %v181_v40  ;;  %v586_v45 = vcombine.low %v176_v36, %v180_v37 }
  0x17   : > { %v588_v46 = vcombine.low %v177_v39, %v181_v40 }
  0x19   : > { %314 = vmatpush1.bf16.msra.mxu0 %v582_v30  ;;  %357 = vmatpush1.bf16.msra.mxu1 %v584_v32 }
  0x1a   : > { %397 = vmatprep.subr.bf16.mxu0 %v291_v33  ;;  %440 = vmatprep.subr.bf16.mxu1 %v297_v35 }
  0x1c   : > { %598 = vmatmul.mubr.msk.bf16.vlgmr.msra.gmra.mxu0 %vm267_vm2, %v621_v38  ;;  %599 = vmatmul.mubr.msk.bf16.vlgmr.msra.gmra.mxu1 %vm267_vm2, %v621_v38 }
  0x1d   : > { %398 = vmatpush1.bf16.msra.mxu0 %v288_v41  ;;  %441 = vmatpush1.bf16.msra.mxu1 %v294_v42 }
  0x1e   : > { %399 = vmatprep.subr.bf16.mxu0 %v587_v43  ;;  %442 = vmatprep.subr.bf16.mxu1 %v589_v44 }
  0x1f   : > { %417 = vmatprep.mubr.bf16.mxu0 %v630_v0  ;;  %460 = vmatprep.mubr.bf16.mxu1 %v630_v0 }
  0x21   : > { %400 = vmatpush1.bf16.msra.mxu0 %v586_v45  ;;  %443 = vmatpush1.bf16.msra.mxu1 %v588_v46 }
  0x24   : > { %600 = vmatmul.mubr.msk.bf16.vlgmr.msra.gmra.mxu0 %vm267_vm2, %v621_v38  ;;  %601 = vmatmul.mubr.msk.bf16.vlgmr.msra.gmra.mxu1 %vm267_vm2, %v621_v38 }
  0x89   : > { %v488_v61 = vpop.permute.xlu0 %487 }
  0x8d   : > { %v493_v13 = vpop.permute.xlu0 %492 }
  0xdc   : > { %v333_v47 = vpop.f32.mrf.mxu0  ;;  %v376_v48 = vpop.f32.mrf.mxu1 }
  0xdd   : > { %v471_v57 = vmax.f32 %v333_v47, %v376_v48 }
  0xde   : > { %v335_v49 = vpop.f32.mrf.mxu0  ;;  %v378_v50 = vpop.f32.mrf.mxu1 }
  0xdf   : > { %v472_v62 = vmax.f32 %v335_v49, %v378_v50 }
  0xe0   : > { %v337_v51 = vpop.f32.mrf.mxu0  ;;  %v380_v52 = vpop.f32.mrf.mxu1 }
  0xe1   : > { %v473_v3 = vmax.f32 %v337_v51, %v380_v52 }
  0xe2   : > { %v339_v53 = vpop.f32.mrf.mxu0  ;;  %v382_v54 = vpop.f32.mrf.mxu1 }
  0xe3   : > { %v474_v9 = vmax.f32 %v339_v53, %v382_v54 }
  0xe4   : > { %v419_v55 = vpop.f32.mrf.mxu0  ;;  %v462_v56 = vpop.f32.mrf.mxu1 }
  0xe5   : > { %v475_v58 = vmax.f32 %v419_v55, %v462_v56 }
  0xe6   : > { %v421_v59 = vpop.f32.mrf.mxu0  ;;  %v464_v60 = vpop.f32.mrf.mxu1 }
  0xe7   : > { %v479_v63 = vmax.f32 %v471_v57, %v475_v58  ;;  %v476_v0 = vmax.f32 %v421_v59, %v464_v60 }
  0xe8   : > { %v423_v1 = vpop.f32.mrf.mxu0  ;;  %v466_v2 = vpop.f32.mrf.mxu1 }
  0xe9   : > { %v480_v4 = vmax.f32 %v472_v62, %v476_v0  ;;  %v495_v5 = vadd.f32 %v488_v61, %v479_v63  ;;  %v477_v6 = vmax.f32 %v423_v1, %v466_v2 }
  0xea   : > { %v425_v7 = vpop.f32.mrf.mxu0  ;;  %v468_v8 = vpop.f32.mrf.mxu1 }
  0xeb   : > { %v496_v10 = vadd.f32 %v488_v61, %v480_v4  ;;  %v478_v11 = vmax.f32 %v425_v7, %v468_v8  ;;  %v481_v12 = vmax.f32 %v473_v3, %v477_v6  ;;  %v499_v14 = vmax.f32 %v495_v5, 0.0 }
  0xed   : > { %v500_v15 = vmax.f32 %v496_v10, 0.0  ;;  %v482_v16 = vmax.f32 %v474_v9, %v478_v11  ;;  %v497_v17 = vadd.f32 %v493_v13, %v481_v12 }
  0xef   : > { %v608_v18 = vpack.c.bf16 %v500_v15, %v499_v14  ;;  %v498_v19 = vadd.f32 %v493_v13, %v482_v16  ;;  %v501_v20 = vmax.f32 %v497_v17, 0.0 }
  0xf1   : > { %v502_v21 = vmax.f32 %v498_v19, 0.0  ;;  %515 = vst [vmem:[%s170_s27] sm:$0xff] %v608_v18 }
  0xf3   : > { %v609_v22 = vpack.c.bf16 %v502_v21, %v501_v20 }
  0xf5   : > { %516 = vst [vmem:[%s170_s27 + $0x8] sm:$0xff] %v609_v22 }
  0xf6 PF: > { %s13_s12 = sadd.s32 1, %s628_s12  }
  0xf7   : > { %p10_p4 = scmp.ge.s32.totalorder %s13_s12, 10  }
  0xf9   :  { %12 = sbr.rel (!%p10_p4) target bundleno = 1 (0x1), region = 62 }

// kernel: dcnn_forward.5
= control target key start
LH: loop header
LB: loop body
LE: loop exit
PB: predicated region body
PF: predicated region fallthrough
CT: control target
= control target key end

     0   :  { %s1142_s12 = smov 0   ;;  %s1302_s0 = inlined_call_operand.vmem [shape: bf16[2,144,1024], index: 0, kind: input, shape index: {}]   ;;  %s1303_s1 = inlined_call_operand.vmem [shape: bf16[32,144], index: 1, kind: input, shape index: {}]   ;;  %s1304_s2 = inlined_call_operand.vmem [shape: f32[32,1], index: 2, kind: input, shape index: {}]   ;;  %s1305_s3 = inlined_call_operand.vmem [shape: bf16[2,32,256], index: 3, kind: output, shape index: {}]  }
   0x1 LB: > { %s992_s13 = sadd.s32 4294967295, %s1119_s12   ;;  %p996_p0 = scmp.ge.s32.totalorder %s1119_s12, 1  ;;  %s1119_s12 = sphi %s1142_s12, %s13_s12  }
   0x2   : > { %p137_p1 = scmp.lt.s32.totalorder %s1119_s12, 3 }
   0x4   : > { %p138_p2 = pnand %p996_p0, %p137_p1 }
   0x5   : > { %p161_p3 = scmp.lt.s32.totalorder (!%p138_p2), %s992_s13, 1 }
   0x6   : > { %141 = sbr.rel (%p138_p2) target bundleno = 309 (0x135), region = 32 }
   0xb   : > { %v1153_v0 = vld [vmem:[%s1303_s1 + $0x4] ss:$8 sps:$4 sm:$0xff]   ;;  %vm626_vm0 = vcmask 130048   ;;  %s1307_s13 = smov (!%p161_p3, %s992_s13), 1  ;;  %v1121_v2 = vmov 0   ;;  %v871_v3 = vld [vmem:[%s1304_s2 + $0x10] sm:$0xff] }
   0xc   : > { %1076 = vmatprep.mubr.msk.bf16.mxu0 %vm626_vm0, %v1153_v0  ;;  %1078 = vmatprep.mubr.msk.bf16.mxu1 %vm626_vm0, %v1153_v0  ;;  %v869_v1 = vld [vmem:[%s1304_s2] sm:$0xff]  ;;  %s1095_s20 = smul.u32 576, %s1307_s13  ;;  %v870_v4 = vld [vmem:[%s1304_s2 + $0x8] sm:$0xff]  ;;  %v872_v5 = vld [vmem:[%s1304_s2 + $0x18] sm:$0xff]  ;;  %s1090_s7 = sshll.u32 %s1307_s13, 5 }
   0xd   : > { %1105 = vset.pattern.permute.xlu0 %v1121_v2  ;;  %1106 = vset.pattern.permute.xlu1 %v1121_v2  ;;  %s1292_s10 = scalar_lea.vmem %s1305_s3, %s1090_s7 }
   0xe   : > { %875 = vperm.xlu0 %1105, %v869_v1   ;;  %885 = vperm.xlu1 %1106, %v871_v3   ;;  %s1177_s27 = scalar_lea.vmem %s1302_s0, %s1095_s20 }
   0xf   : > { %v232_v6 = vld [vmem:[%s1177_s27 + $0x1c0] sm:$0xff]  ;;  %v233_v8 = vld [vmem:[%s1177_s27 + $0x1c8] sm:$0xff] }
  0x10   : > { %v236_v7 = vld [vmem:[%s1177_s27 + $0x1e0] sm:$0xff]  ;;  %v237_v10 = vld [vmem:[%s1177_s27 + $0x1e8] sm:$0xff] }
  0x11   : > { %v1061_v9 = vcombine.high %v232_v6, %v236_v7  ;;  %v1060_v11 = vcombine.low %v232_v6, %v236_v7  ;;  %v224_v12 = vld [vmem:[%s1177_s27 + $0x180] sm:$0xff]  ;;  %v1063_v14 = vcombine.high %v233_v8, %v237_v10  ;;  %v1062_v15 = vcombine.low %v233_v8, %v237_v10  ;;  %v225_v17 = vld [vmem:[%s1177_s27 + $0x188] sm:$0xff] }
  0x12   : > { %v228_v13 = vld [vmem:[%s1177_s27 + $0x1a0] sm:$0xff]  ;;  %880 = vperm.xlu0 %1105, %v870_v4   ;;  %890 = vperm.xlu1 %1106, %v872_v5   ;;  %v229_v18 = vld [vmem:[%s1177_s27 + $0x1a8] sm:$0xff] }
  0x13   : > { %v1053_v16 = vcombine.high %v224_v12, %v228_v13  ;;  %v216_v19 = vld [vmem:[%s1177_s27 + $0x140] sm:$0xff]  ;;  %633 = vmatprep.subr.bf16.mxu0 %v1061_v9  ;;  %v1055_v20 = vcombine.high %v225_v17, %v229_v18  ;;  %v217_v22 = vld [vmem:[%s1177_s27 + $0x148] sm:$0xff]  ;;  %686 = vmatprep.subr.bf16.mxu1 %v1063_v14  ;;  %v1052_v24 = vcombine.low %v224_v12, %v228_v13  ;;  %v234_v13 = vld [vmem:[%s1177_s27 + $0x1d0] sm:$0xff] }
  0x14   : > { %v220_v21 = vld [vmem:[%s1177_s27 + $0x160] sm:$0xff]  ;;  %v221_v23 = vld [vmem:[%s1177_s27 + $0x168] sm:$0xff]  ;;  %634 = vmatpush1.bf16.msra.mxu0 %v1060_v11  ;;  %687 = vmatpush1.bf16.msra.mxu1 %v1062_v15  ;;  %v1054_v25 = vcombine.low %v225_v17, %v229_v18  ;;  %v238_v14 = vld [vmem:[%s1177_s27 + $0x1f0] sm:$0xff] }
  0x15   : > { %635 = vmatprep.subr.bf16.mxu0 %v1053_v16  ;;  %v1045_v26 = vcombine.high %v216_v19, %v220_v21  ;;  %688 = vmatprep.subr.bf16.mxu1 %v1055_v20  ;;  %v1047_v27 = vcombine.high %v217_v22, %v221_v23  ;;  %v208_v28 = vld [vmem:[%s1177_s27 + $0x100] sm:$0xff]  ;;  %v209_v30 = vld [vmem:[%s1177_s27 + $0x108] sm:$0xff]  ;;  %v1044_v32 = vcombine.low %v216_v19, %v220_v21  ;;  %v235_v15 = vld [vmem:[%s1177_s27 + $0x1d8] sm:$0xff] }
  0x16   : > { %v212_v29 = vld [vmem:[%s1177_s27 + $0x120] sm:$0xff]  ;;  %v213_v31 = vld [vmem:[%s1177_s27 + $0x128] sm:$0xff]  ;;  %v1046_v33 = vcombine.low %v217_v22, %v221_v23  ;;  %v239_v16 = vld [vmem:[%s1177_s27 + $0x1f8] sm:$0xff]  ;;  %v1065_v19 = vcombine.high %v234_v13, %v238_v14 }
  0x17   : > { %v1037_v34 = vcombine.high %v208_v28, %v212_v29  ;;  %v1039_v35 = vcombine.high %v209_v30, %v213_v31  ;;  %v200_v36 = vld [vmem:[%s1177_s27 + $0xc0] sm:$0xff]  ;;  %v201_v38 = vld [vmem:[%s1177_s27 + $0xc8] sm:$0xff]  ;;  %v1036_v40 = vcombine.low %v208_v28, %v212_v29  ;;  %v1038_v41 = vcombine.low %v209_v30, %v213_v31  ;;  %v226_v21 = vld [vmem:[%s1177_s27 + $0x190] sm:$0xff] }
  0x18   : > { %636 = vmatpush1.bf16.msra.mxu0 %v1052_v24  ;;  %689 = vmatpush1.bf16.msra.mxu1 %v1054_v25  ;;  %v204_v37 = vld [vmem:[%s1177_s27 + $0xe0] sm:$0xff]  ;;  %v205_v39 = vld [vmem:[%s1177_s27 + $0xe8] sm:$0xff]  ;;  %v1067_v20 = vcombine.high %v235_v15, %v239_v16  ;;  %v230_v22 = vld [vmem:[%s1177_s27 + $0x1b0] sm:$0xff] }
  0x19   : > { %637 = vmatprep.subr.bf16.mxu0 %v1045_v26  ;;  %690 = vmatprep.subr.bf16.mxu1 %v1047_v27  ;;  %v1029_v42 = vcombine.high %v200_v36, %v204_v37  ;;  %v1031_v43 = vcombine.high %v201_v38, %v205_v39  ;;  %v192_v44 = vld [vmem:[%s1177_s27 + $0x80] sm:$0xff]  ;;  %v193_v46 = vld [vmem:[%s1177_s27 + $0x88] sm:$0xff]  ;;  %v1028_v48 = vcombine.low %v200_v36, %v204_v37  ;;  %v227_v24 = vld [vmem:[%s1177_s27 + $0x198] sm:$0xff] }
  0x1a   : > { %v196_v45 = vld [vmem:[%s1177_s27 + $0xa0] sm:$0xff]  ;;  %v197_v47 = vld [vmem:[%s1177_s27 + $0xa8] sm:$0xff]  ;;  %v1030_v49 = vcombine.low %v201_v38, %v205_v39  ;;  %v231_v25 = vld [vmem:[%s1177_s27 + $0x1b8] sm:$0xff]  ;;  %v1064_v26 = vcombine.low %v234_v13, %v238_v14  ;;  %v1066_v27 = vcombine.low %v235_v15, %v239_v16  ;;  %v1057_v28 = vcombine.high %v226_v21, %v230_v22 }
  0x1b   : > { %v1021_v50 = vcombine.high %v192_v44, %v196_v45  ;;  %v1023_v51 = vcombine.high %v193_v46, %v197_v47  ;;  %v184_v52 = vld [vmem:[%s1177_s27 + $0x40] sm:$0xff]  ;;  %v185_v54 = vld [vmem:[%s1177_s27 + $0x48] sm:$0xff]  ;;  %v1020_v56 = vcombine.low %v192_v44, %v196_v45  ;;  %v1022_v57 = vcombine.low %v193_v46, %v197_v47  ;;  %v218_v30 = vld [vmem:[%s1177_s27 + $0x150] sm:$0xff] }
  0x1c   : > { %638 = vmatpush1.bf16.msra.mxu0 %v1044_v32  ;;  %691 = vmatpush1.bf16.msra.mxu1 %v1046_v33  ;;  %v188_v53 = vld [vmem:[%s1177_s27 + $0x60] sm:$0xff]  ;;  %v189_v55 = vld [vmem:[%s1177_s27 + $0x68] sm:$0xff]  ;;  %v1059_v29 = vcombine.high %v227_v24, %v231_v25  ;;  %v222_v31 = vld [vmem:[%s1177_s27 + $0x170] sm:$0xff]  ;;  %v1058_v36 = vcombine.low %v227_v24, %v231_v25 }
  0x1d   : > { %639 = vmatprep.subr.bf16.mxu0 %v1037_v34  ;;  %692 = vmatprep.subr.bf16.mxu1 %v1039_v35  ;;  %v1013_v58 = vcombine.high %v184_v52, %v188_v53  ;;  %v1015_v59 = vcombine.high %v185_v54, %v189_v55  ;;  %v176_v60 = vld [vmem:[%s1177_s27] sm:$0xff]  ;;  %v177_v62 = vld [vmem:[%s1177_s27 + $0x8] sm:$0xff]  ;;  %v1012_v1 = vcombine.low %v184_v52, %v188_v53  ;;  %v1233_v32 = vld [vmem:[%s1303_s1 + $0x14] ss:$8 sps:$4 sm:$0xff]  }
  0x1e   : > { %v180_v61 = vld [vmem:[%s1177_s27 + $0x20] sm:$0xff]  ;;  %v181_v63 = vld [vmem:[%s1177_s27 + $0x28] sm:$0xff]  ;;  %v1014_v2 = vcombine.low %v185_v54, %v189_v55  ;;  %v219_v33 = vld [vmem:[%s1177_s27 + $0x158] sm:$0xff]  ;;  %v1056_v35 = vcombine.low %v226_v21, %v230_v22  ;;  %v1049_v37 = vcombine.high %v218_v30, %v222_v31  ;;  %v1048_v44 = vcombine.low %v218_v30, %v222_v31 }
  0x1f   : > { %v1005_v3 = vcombine.high %v176_v60, %v180_v61  ;;  %v1007_v4 = vcombine.high %v177_v62, %v181_v63  ;;  %v240_v5 = vld [vmem:[%s1177_s27 + $0x200] sm:$0xff]  ;;  %v241_v7 = vld [vmem:[%s1177_s27 + $0x208] sm:$0xff]  ;;  %v1004_v9 = vcombine.low %v176_v60, %v180_v61  ;;  %v1006_v10 = vcombine.low %v177_v62, %v181_v63  ;;  %v223_v34 = vld [vmem:[%s1177_s27 + $0x178] sm:$0xff] }
  0x20   : > { %640 = vmatpush1.bf16.msra.mxu0 %v1036_v40  ;;  %693 = vmatpush1.bf16.msra.mxu1 %v1038_v41  ;;  %v244_v6 = vld [vmem:[%s1177_s27 + $0x220] sm:$0xff]  ;;  %v245_v8 = vld [vmem:[%s1177_s27 + $0x228] sm:$0xff]  ;;  %v1051_v38 = vcombine.high %v219_v33, %v223_v34  ;;  %v210_v39 = vld [vmem:[%s1177_s27 + $0x110] sm:$0xff]  ;;  %v1050_v45 = vcombine.low %v219_v33, %v223_v34 }
  0x21   : > { %641 = vmatprep.subr.bf16.mxu0 %v1029_v42  ;;  %694 = vmatprep.subr.bf16.mxu1 %v1031_v43  ;;  %v1069_v11 = vcombine.high %v240_v5, %v244_v6  ;;  %v1071_v12 = vcombine.high %v241_v7, %v245_v8  ;;  %v1068_v17 = vcombine.low %v240_v5, %v244_v6  ;;  %v1224_v23 = vld [vmem:[%s1303_s1] ss:$8 sps:$4 sm:$0xff]   ;;  %v214_v40 = vld [vmem:[%s1177_s27 + $0x130] sm:$0xff]  ;;  %v211_v41 = vld [vmem:[%s1177_s27 + $0x118] sm:$0xff] }
  0x22   : > { %v1070_v18 = vcombine.low %v241_v7, %v245_v8  ;;  %v215_v42 = vld [vmem:[%s1177_s27 + $0x138] sm:$0xff]  ;;  %v1041_v46 = vcombine.high %v210_v39, %v214_v40  ;;  %v1040_v52 = vcombine.low %v210_v39, %v214_v40  ;;  %v178_v8 = vld [vmem:[%s1177_s27 + $0x10] sm:$0xff] }
  0x23   : > { %v1250_v43 = vld [vmem:[%s1303_s1 + $0x10] ss:$8 sps:$4 sm:$0xff]   ;;  %v1043_v47 = vcombine.high %v211_v41, %v215_v42  ;;  %v1042_v53 = vcombine.low %v211_v41, %v215_v42 }
  0x24   : > { %642 = vmatpush1.bf16.msra.mxu0 %v1028_v48  ;;  %695 = vmatpush1.bf16.msra.mxu1 %v1030_v49  ;;  %v202_v48 = vld [vmem:[%s1177_s27 + $0xd0] sm:$0xff] }
  0x25   : > { %643 = vmatprep.subr.bf16.mxu0 %v1021_v50  ;;  %696 = vmatprep.subr.bf16.mxu1 %v1023_v51  ;;  %v206_v49 = vld [vmem:[%s1177_s27 + $0xf0] sm:$0xff]  ;;  %v203_v50 = vld [vmem:[%s1177_s27 + $0xd8] sm:$0xff] }
  0x26   : > { %v207_v51 = vld [vmem:[%s1177_s27 + $0xf8] sm:$0xff]  ;;  %v1033_v54 = vcombine.high %v202_v48, %v206_v49  ;;  %v1032_v60 = vcombine.low %v202_v48, %v206_v49  ;;  %v242_v16 = vld [vmem:[%s1177_s27 + $0x210] sm:$0xff] }
  0x27   : > { %v1035_v55 = vcombine.high %v203_v50, %v207_v51  ;;  %v1034_v61 = vcombine.low %v203_v50, %v207_v51 }
  0x28   : > { %644 = vmatpush1.bf16.msra.mxu0 %v1020_v56  ;;  %697 = vmatpush1.bf16.msra.mxu1 %v1022_v57  ;;  %v194_v56 = vld [vmem:[%s1177_s27 + $0x90] sm:$0xff] }
  0x29   : > { %645 = vmatprep.subr.bf16.mxu0 %v1013_v58  ;;  %698 = vmatprep.subr.bf16.mxu1 %v1015_v59  ;;  %v198_v57 = vld [vmem:[%s1177_s27 + $0xb0] sm:$0xff]  ;;  %v195_v58 = vld [vmem:[%s1177_s27 + $0x98] sm:$0xff] }
  0x2a   : > { %v199_v59 = vld [vmem:[%s1177_s27 + $0xb8] sm:$0xff]  ;;  %v1025_v62 = vcombine.high %v194_v56, %v198_v57  ;;  %v1024_v5 = vcombine.low %v194_v56, %v198_v57 }
  0x2b   : > { %v1027_v63 = vcombine.high %v195_v58, %v199_v59 }
  0x2c   : > { %646 = vmatpush1.bf16.msra.mxu0 %v1012_v1  ;;  %699 = vmatpush1.bf16.msra.mxu1 %v1014_v2  ;;  %v186_v1 = vld [vmem:[%s1177_s27 + $0x50] sm:$0xff] }
  0x2d   : > { %647 = vmatprep.subr.bf16.mxu0 %v1005_v3  ;;  %700 = vmatprep.subr.bf16.mxu1 %v1007_v4  ;;  %v190_v2 = vld [vmem:[%s1177_s27 + $0x70] sm:$0xff]  ;;  %v187_v3 = vld [vmem:[%s1177_s27 + $0x58] sm:$0xff] }
  0x2e   : > { %v191_v4 = vld [vmem:[%s1177_s27 + $0x78] sm:$0xff]  ;;  %v1017_v6 = vcombine.high %v186_v1, %v190_v2 }
  0x2f   : > { %v1019_v7 = vcombine.high %v187_v3, %v191_v4  ;;  %v1018_v13 = vcombine.low %v187_v3, %v191_v4 }
  0x30   : > { %648 = vmatpush1.bf16.msra.mxu0 %v1004_v9  ;;  %701 = vmatpush1.bf16.msra.mxu1 %v1006_v10  ;;  %v182_v9 = vld [vmem:[%s1177_s27 + $0x30] sm:$0xff]  ;;  %v179_v10 = vld [vmem:[%s1177_s27 + $0x18] sm:$0xff] }
  0x31   : > { %663 = vmatprep.subr.bf16.mxu0 %v1069_v11  ;;  %716 = vmatprep.subr.bf16.mxu1 %v1071_v12  ;;  %v183_v11 = vld [vmem:[%s1177_s27 + $0x38] sm:$0xff]  ;;  %v1016_v12 = vcombine.low %v186_v1, %v190_v2  ;;  %v1009_v14 = vcombine.high %v178_v8, %v182_v9 }
  0x32   : > { %v1011_v15 = vcombine.high %v179_v10, %v183_v11  ;;  %v1010_v21 = vcombine.low %v179_v10, %v183_v11 }
  0x34   : > { %664 = vmatpush2.bf16.msra.mxu0 %v1068_v17  ;;  %717 = vmatpush2.bf16.msra.mxu1 %v1070_v18  ;;  %v246_v17 = vld [vmem:[%s1177_s27 + $0x230] sm:$0xff]  ;;  %v243_v18 = vld [vmem:[%s1177_s27 + $0x218] sm:$0xff] }
  0x35   : > { %739 = vmatprep.subr.bf16.mxu0 %v1065_v19  ;;  %792 = vmatprep.subr.bf16.mxu1 %v1067_v20  ;;  %v247_v19 = vld [vmem:[%s1177_s27 + $0x238] sm:$0xff]  ;;  %v1008_v20 = vcombine.low %v178_v8, %v182_v9  ;;  %v1073_v22 = vcombine.high %v242_v16, %v246_v17  ;;  %v1072_v25 = vcombine.low %v242_v16, %v246_v17 }
  0x36   : > { %v1075_v24 = vcombine.high %v243_v18, %v247_v19 }
  0x37   : > { %666 = vmatmul.mubr.bf16.vlgmr.msra.gmra.mxu0 %v1224_v23  ;;  %719 = vmatmul.mubr.bf16.vlgmr.msra.gmra.mxu1 %v1224_v23 }
  0x38   : > { %740 = vmatpush1.bf16.msra.mxu0 %v1064_v26  ;;  %793 = vmatpush1.bf16.msra.mxu1 %v1066_v27  ;;  %v1074_v26 = vcombine.low %v243_v18, %v247_v19 }
  0x39   : > { %741 = vmatprep.subr.bf16.mxu0 %v1057_v28  ;;  %794 = vmatprep.subr.bf16.mxu1 %v1059_v29 }
  0x3a   : > { %1077 = vmatprep.mubr.msk.bf16.mxu0 %vm626_vm0, %v1233_v32  ;;  %1079 = vmatprep.mubr.msk.bf16.mxu1 %vm626_vm0, %v1233_v32 }
  0x3c   : > { %742 = vmatpush1.bf16.msra.mxu0 %v1056_v35  ;;  %795 = vmatpush1.bf16.msra.mxu1 %v1058_v36 }
  0x3d   : > { %743 = vmatprep.subr.bf16.mxu0 %v1049_v37  ;;  %796 = vmatprep.subr.bf16.mxu1 %v1051_v38 }
  0x3f   : > { %676 = vmatmul.mubr.bf16.gmra.mxu0 %v1250_v43  ;;  %729 = vmatmul.mubr.bf16.gmra.mxu1 %v1250_v43 }
  0x40   : > { %744 = vmatpush1.bf16.msra.mxu0 %v1048_v44  ;;  %797 = vmatpush1.bf16.msra.mxu1 %v1050_v45 }
  0x41   : > { %745 = vmatprep.subr.bf16.mxu0 %v1041_v46  ;;  %798 = vmatprep.subr.bf16.mxu1 %v1043_v47 }
  0x42   : > { %1080 = vmatprep.mubr.msk.bf16.mxu0 %vm626_vm0, %v1153_v0  ;;  %1082 = vmatprep.mubr.msk.bf16.mxu1 %vm626_vm0, %v1153_v0  ;;  %v1026_v0 = vcombine.low %v195_v58, %v199_v59 }
  0x44   : > { %746 = vmatpush1.bf16.msra.mxu0 %v1040_v52  ;;  %799 = vmatpush1.bf16.msra.mxu1 %v1042_v53 }
  0x45   : > { %747 = vmatprep.subr.bf16.mxu0 %v1033_v54  ;;  %800 = vmatprep.subr.bf16.mxu1 %v1035_v55 }
  0x48   : > { %748 = vmatpush1.bf16.msra.mxu0 %v1032_v60  ;;  %801 = vmatpush1.bf16.msra.mxu1 %v1034_v61 }
  0x49   : > { %749 = vmatprep.subr.bf16.mxu0 %v1025_v62  ;;  %802 = vmatprep.subr.bf16.mxu1 %v1027_v63 }
  0x4c   : > { %750 = vmatpush1.bf16.msra.mxu0 %v1024_v5  ;;  %803 = vmatpush1.bf16.msra.mxu1 %v1026_v0 }
  0x4d   : > { %751 = vmatprep.subr.bf16.mxu0 %v1017_v6  ;;  %804 = vmatprep.subr.bf16.mxu1 %v1019_v7 }
  0x50   : > { %752 = vmatpush1.bf16.msra.mxu0 %v1016_v12  ;;  %805 = vmatpush1.bf16.msra.mxu1 %v1018_v13 }
  0x51   : > { %753 = vmatprep.subr.bf16.mxu0 %v1009_v14  ;;  %806 = vmatprep.subr.bf16.mxu1 %v1011_v15 }
  0x54   : > { %754 = vmatpush1.bf16.msra.mxu0 %v1008_v20  ;;  %807 = vmatpush1.bf16.msra.mxu1 %v1010_v21 }
  0x55   : > { %769 = vmatprep.subr.bf16.mxu0 %v1073_v22  ;;  %822 = vmatprep.subr.bf16.mxu1 %v1075_v24 }
  0x58   : > { %770 = vmatpush2.bf16.msra.mxu0 %v1072_v25  ;;  %823 = vmatpush2.bf16.msra.mxu1 %v1074_v26 }
  0x5b   : > { %772 = vmatmul.mubr.bf16.vlgmr.msra.gmra.mxu0 %v1224_v23  ;;  %825 = vmatmul.mubr.bf16.vlgmr.msra.gmra.mxu1 %v1224_v23 }
  0x5c   : > { %1081 = vmatprep.mubr.msk.bf16.mxu0 %vm626_vm0, %v1233_v32  ;;  %1083 = vmatprep.mubr.msk.bf16.mxu1 %vm626_vm0, %v1233_v32 }
  0x63   : > { %782 = vmatmul.mubr.bf16.gmra.mxu0 %v1250_v43  ;;  %835 = vmatmul.mubr.bf16.gmra.mxu1 %v1250_v43 }
  0x89   : > { %v876_v43 = vpop.permute.xlu0 %875  ;;  %v886_v10 = vpop.permute.xlu1 %885 }
  0x8d   : > { %v881_v60 = vpop.permute.xlu0 %880 }
  0xf7   : > { %v667_v27 = vpop.f32.mrf.mxu0  ;;  %v720_v28 = vpop.f32.mrf.mxu1 }
  0xf8   : > { %v845_v45 = vmax.f32 %v667_v27, %v720_v28 }
  0xf9   : > { %v669_v29 = vpop.f32.mrf.mxu0  ;;  %v722_v30 = vpop.f32.mrf.mxu1 }
  0xfa   : > { %v846_v49 = vmax.f32 %v669_v29, %v722_v30 }
  0xfb   : > { %v671_v31 = vpop.f32.mrf.mxu0  ;;  %v724_v33 = vpop.f32.mrf.mxu1 }
  0xfc   : > { %v847_v54 = vmax.f32 %v671_v31, %v724_v33 }
  0xfd   : > { %v673_v34 = vpop.f32.mrf.mxu0  ;;  %v726_v35 = vpop.f32.mrf.mxu1 }
  0xfe   : > { %v848_v61 = vmax.f32 %v673_v34, %v726_v35  ;;  %v891_v34 = vpop.permute.xlu1 %890 }
  0xff   : > { %v677_v36 = vpop.f32.mrf.mxu0  ;;  %v730_v23 = vpop.f32.mrf.mxu1 }
 0x100   : > { %v849_v3 = vmax.f32 %v677_v36, %v730_v23 }
 0x101   : > { %v679_v37 = vpop.f32.mrf.mxu0  ;;  %v732_v38 = vpop.f32.mrf.mxu1 }
 0x102   : > { %v850_v16 = vmax.f32 %v679_v37, %v732_v38 }
 0x103   : > { %v681_v39 = vpop.f32.mrf.mxu0  ;;  %v734_v40 = vpop.f32.mrf.mxu1 }
 0x104   : > { %v851_v19 = vmax.f32 %v681_v39, %v734_v40 }
 0x105   : > { %v1286_v41 = vpop.f32.mrf.mxu0  ;;  %v736_v32 = vpop.f32.mrf.mxu1 }
 0x106   : > { %v852_v28 = vmax.f32 %v1286_v41, %v736_v32 }
 0x11b   : > { %v773_v42 = vpop.f32.mrf.mxu0  ;;  %v826_v44 = vpop.f32.mrf.mxu1 }
 0x11c   : > { %v853_v46 = vmax.f32 %v773_v42, %v826_v44 }
 0x11d   : > { %v775_v47 = vpop.f32.mrf.mxu0  ;;  %v828_v48 = vpop.f32.mrf.mxu1 }
 0x11e   : > { %v861_v50 = vmax.f32 %v845_v45, %v853_v46  ;;  %v854_v51 = vmax.f32 %v775_v47, %v828_v48 }
 0x11f   : > { %v777_v52 = vpop.f32.mrf.mxu0  ;;  %v830_v53 = vpop.f32.mrf.mxu1 }
 0x120   : > { %v862_v55 = vmax.f32 %v846_v49, %v854_v51  ;;  %v893_v56 = vadd.f32 %v876_v43, %v861_v50  ;;  %v855_v57 = vmax.f32 %v777_v52, %v830_v53 }
 0x121   : > { %v779_v58 = vpop.f32.mrf.mxu0  ;;  %v832_v59 = vpop.f32.mrf.mxu1 }
 0x122   : > { %v894_v62 = vadd.f32 %v876_v43, %v862_v55  ;;  %v856_v63 = vmax.f32 %v779_v58, %v832_v59  ;;  %v863_v1 = vmax.f32 %v847_v54, %v855_v57  ;;  %v901_v4 = vmax.f32 %v893_v56, 0.0 }
 0x123   : > { %v783_v2 = vpop.f32.mrf.mxu0  ;;  %v836_v5 = vpop.f32.mrf.mxu1 }
 0x124   : > { %v902_v0 = vmax.f32 %v894_v62, 0.0  ;;  %v864_v6 = vmax.f32 %v848_v61, %v856_v63  ;;  %v895_v7 = vadd.f32 %v881_v60, %v863_v1  ;;  %v857_v8 = vmax.f32 %v783_v2, %v836_v5 }
 0x125   : > { %v785_v9 = vpop.f32.mrf.mxu0  ;;  %v838_v11 = vpop.f32.mrf.mxu1 }
 0x126   : > { %v1091_v12 = vpack.c.bf16 %v902_v0, %v901_v4  ;;  %v896_v13 = vadd.f32 %v881_v60, %v864_v6  ;;  %v865_v14 = vmax.f32 %v849_v3, %v857_v8  ;;  %v858_v17 = vmax.f32 %v785_v9, %v838_v11 }
 0x127   : > { %v787_v15 = vpop.f32.mrf.mxu0  ;;  %v840_v18 = vpop.f32.mrf.mxu1  ;;  %v903_v20 = vmax.f32 %v895_v7, 0.0 }
 0x128   : > { %933 = vst [vmem:[%s1292_s10] sm:$0xff] %v1091_v12  ;;  %v904_v21 = vmax.f32 %v896_v13, 0.0  ;;  %v859_v22 = vmax.f32 %v787_v15, %v840_v18  ;;  %v897_v25 = vadd.f32 %v886_v10, %v865_v14  ;;  %v866_v26 = vmax.f32 %v850_v16, %v858_v17 }
 0x129   : > { %v789_v24 = vpop.f32.mrf.mxu0  ;;  %v842_v27 = vpop.f32.mrf.mxu1 }
 0x12a   : > { %v1092_v29 = vpack.c.bf16 %v904_v21, %v903_v20  ;;  %v867_v30 = vmax.f32 %v851_v19, %v859_v22  ;;  %v860_v31 = vmax.f32 %v789_v24, %v842_v27  ;;  %v898_v33 = vadd.f32 %v886_v10, %v866_v26 }
 0x12b   : > { %v905_v23 = vmax.f32 %v897_v25, 0.0 }
 0x12c   : > { %934 = vst [vmem:[%s1292_s10 + $0x8] sm:$0xff] %v1092_v29  ;;  %v899_v35 = vadd.f32 %v891_v34, %v867_v30  ;;  %v868_v36 = vmax.f32 %v852_v28, %v860_v31  ;;  %v906_v37 = vmax.f32 %v898_v33, 0.0 }
 0x12e   : > { %v900_v38 = vadd.f32 %v891_v34, %v868_v36  ;;  %v1093_v39 = vpack.c.bf16 %v906_v37, %v905_v23  ;;  %v907_v40 = vmax.f32 %v899_v35, 0.0 }
 0x130   : > { %v908_v42 = vmax.f32 %v900_v38, 0.0  ;;  %935 = vst [vmem:[%s1292_s10 + $0x10] sm:$0xff] %v1093_v39 }
 0x132   : > { %v1094_v44 = vpack.c.bf16 %v908_v42, %v907_v40 }
 0x134   : > { %936 = vst [vmem:[%s1292_s10 + $0x18] sm:$0xff] %v1094_v44 }
 0x135 PF: > { %s13_s12 = sadd.s32 1, %s1119_s12  }
 0x136   : > { %p10_p4 = scmp.ge.s32.totalorder %s13_s12, 4  }
 0x138   :  { %12 = sbr.rel (!%p10_p4) target bundleno = 1 (0x1), region = 62 }

// kernel: dcnn_forward.6
= control target key start
LH: loop header
LB: loop body
LE: loop exit
PB: predicated region body
PF: predicated region fallthrough
CT: control target
= control target key end

     0   :  { %v1222_v1 = vmov 0   ;;  %vm523_vm0 = vcmask 261120   ;;  %s1631_s0 = inlined_call_operand.vmem [shape: bf16[1,288,512], index: 0, kind: input, shape index: {}]   ;;  %s1632_s1 = inlined_call_operand.vmem [shape: bf16[64,288], index: 1, kind: input, shape index: {}]   ;;  %s1633_s2 = inlined_call_operand.vmem [shape: f32[64,1], index: 2, kind: input, shape index: {}]   ;;  %s1634_s3 = inlined_call_operand.vmem [shape: bf16[1,64,128], index: 3, kind: output, shape index: {}]  }
   0x1   :  { %v1098_v0 = vld [vmem:[%s1631_s0 + $0xe4] ss:$16 sps:$4 sm:$0xff]   ;;  %641 = vmatprep.mubr.bf16.mxu1 %v1222_v1  ;;  %1096 = vset.pattern.permute.xlu0 %v1222_v1  ;;  %v1102_v3 = vld [vmem:[%s1631_s0 + $0xe0] ss:$16 sps:$4 sm:$0xff]   ;;  %v1112_v10 = vld [vmem:[%s1631_s0 + $0xe8] ss:$16 sps:$4 sm:$0xff]  }
   0x2   :  { %v1100_v2 = vld [vmem:[%s1631_s0 + $0x224] ss:$16 sps:$4 sm:$0xff]   ;;  %1097 = vset.pattern.permute.xlu1 %v1222_v1  ;;  %536 = vmatprep.subr.bf16.mxu0 %v1098_v0  ;;  %v1103_v4 = vld [vmem:[%s1631_s0 + $0x220] ss:$16 sps:$4 sm:$0xff]   ;;  %v1114_v11 = vld [vmem:[%s1631_s0 + $0xec] ss:$16 sps:$4 sm:$0xff]  }
   0x3   :  { %621 = vmatprep.subr.bf16.mxu1 %v1100_v2  ;;  %v1104_v5 = vld [vmem:[%s1631_s0 + $0xc4] ss:$16 sps:$4 sm:$0xff]   ;;  %537 = vmatpush1.bf16.msra.mxu0 %v1102_v3  ;;  %v1108_v7 = vld [vmem:[%s1631_s0 + $0xc0] ss:$16 sps:$4 sm:$0xff]   ;;  %v1119_v15 = vld [vmem:[%s1631_s0 + $0xc8] ss:$16 sps:$4 sm:$0xff]  }
   0x4   :  { %622 = vmatpush1.bf16.msra.mxu1 %v1103_v4  ;;  %v1106_v6 = vld [vmem:[%s1631_s0 + $0x204] ss:$16 sps:$4 sm:$0xff]   ;;  %538 = vmatprep.subr.bf16.mxu0 %v1104_v5  ;;  %v1109_v8 = vld [vmem:[%s1631_s0 + $0x200] ss:$16 sps:$4 sm:$0xff]   ;;  %v1121_v16 = vld [vmem:[%s1631_s0 + $0xcc] ss:$16 sps:$4 sm:$0xff]  }
   0x5   :  { %623 = vmatprep.subr.bf16.mxu1 %v1106_v6  ;;  %v1110_v9 = vld [vmem:[%s1631_s0 + $0xa4] ss:$16 sps:$4 sm:$0xff]   ;;  %v1115_v12 = vld [vmem:[%s1631_s0 + $0xa0] ss:$16 sps:$4 sm:$0xff]   ;;  %v1127_v19 = vld [vmem:[%s1631_s0 + $0xac] ss:$16 sps:$4 sm:$0xff]  }
   0x6   :  { %v1285_v13 = vld [vmem:[%s1632_s1 + $0x8] ss:$12 sps:$4 sm:$0xff]   ;;  %v1122_v17 = vld [vmem:[%s1631_s0 + $0x80] ss:$16 sps:$4 sm:$0xff]   ;;  %v1133_v23 = vld [vmem:[%s1631_s0 + $0x8c] ss:$16 sps:$4 sm:$0xff]  }
   0x7   :  { %539 = vmatpush1.bf16.msra.mxu0 %v1108_v7  ;;  %v1117_v14 = vld [vmem:[%s1631_s0 + $0x84] ss:$16 sps:$4 sm:$0xff]   ;;  %v1125_v20 = vld [vmem:[%s1631_s0 + $0xa8] ss:$16 sps:$4 sm:$0xff]   ;;  %v1128_v21 = vld [vmem:[%s1631_s0 + $0x60] ss:$16 sps:$4 sm:$0xff]  }
   0x8   :  { %624 = vmatpush1.bf16.msra.mxu1 %v1109_v8  ;;  %540 = vmatprep.subr.bf16.mxu0 %v1110_v9  ;;  %v1123_v18 = vld [vmem:[%s1631_s0 + $0x64] ss:$16 sps:$4 sm:$0xff]   ;;  %v1131_v24 = vld [vmem:[%s1631_s0 + $0x88] ss:$16 sps:$4 sm:$0xff]   ;;  %v1134_v25 = vld [vmem:[%s1631_s0 + $0x40] ss:$16 sps:$4 sm:$0xff]  }
   0x9   :  { %682 = vmatprep.subr.bf16.mxu1 %v1114_v11  ;;  %v1129_v22 = vld [vmem:[%s1631_s0 + $0x44] ss:$16 sps:$4 sm:$0xff]   ;;  %v1139_v27 = vld [vmem:[%s1631_s0 + $0x6c] ss:$16 sps:$4 sm:$0xff]   ;;  %v1137_v28 = vld [vmem:[%s1631_s0 + $0x68] ss:$16 sps:$4 sm:$0xff]  }
   0xa   :  { %v1135_v26 = vld [vmem:[%s1631_s0 + $0x24] ss:$16 sps:$4 sm:$0xff]   ;;  %v1140_v29 = vld [vmem:[%s1631_s0 + $0x20] ss:$16 sps:$4 sm:$0xff]   ;;  %v1145_v31 = vld [vmem:[%s1631_s0 + $0x4c] ss:$16 sps:$4 sm:$0xff]  }
   0xb   :  { %1044 = vmatmul.mubr.msk.bf16.vlgmr.msra.gmra.mxu1 %vm523_vm0, %v1285_v13  ;;  %541 = vmatpush1.bf16.msra.mxu0 %v1115_v12  ;;  %v1141_v30 = vld [vmem:[%s1631_s0 + $0x4] ss:$16 sps:$4 sm:$0xff]   ;;  %v1143_v32 = vld [vmem:[%s1631_s0 + $0x48] ss:$16 sps:$4 sm:$0xff]   ;;  %v1146_v33 = vld [vmem:[%s1631_s0] ss:$16 sps:$4 sm:$0xff]  }
   0xc   :  { %683 = vmatpush1.bf16.msra.mxu1 %v1112_v10  ;;  %542 = vmatprep.subr.bf16.mxu0 %v1117_v14  ;;  %v1147_v34 = vld [vmem:[%s1631_s0 + $0x1e4] ss:$16 sps:$4 sm:$0xff]   ;;  %v1151_v35 = vld [vmem:[%s1631_s0 + $0x2c] ss:$16 sps:$4 sm:$0xff]   ;;  %v1149_v36 = vld [vmem:[%s1631_s0 + $0x28] ss:$16 sps:$4 sm:$0xff]  }
   0xd   :  { %684 = vmatprep.subr.bf16.mxu1 %v1121_v16  ;;  %651 = vmatprep.mubr.bf16.mxu1 %v1222_v1  ;;  %v1152_v37 = vld [vmem:[%s1631_s0 + $0x1e0] ss:$16 sps:$4 sm:$0xff]   ;;  %v1153_v38 = vld [vmem:[%s1631_s0 + $0x1c4] ss:$16 sps:$4 sm:$0xff]   ;;  %v1157_v39 = vld [vmem:[%s1631_s0 + $0xc] ss:$16 sps:$4 sm:$0xff]  }
   0xe   :  { %v1371_v40 = vld [vmem:[%s1632_s1 + $0x20] ss:$12 sps:$4 sm:$0xff]   ;;  %v1155_v41 = vld [vmem:[%s1631_s0 + $0x8] ss:$16 sps:$4 sm:$0xff]   ;;  %v1159_v43 = vld [vmem:[%s1631_s0 + $0x1a4] ss:$16 sps:$4 sm:$0xff]  }
   0xf   :  { %543 = vmatpush1.bf16.msra.mxu0 %v1122_v17  ;;  %v1158_v42 = vld [vmem:[%s1631_s0 + $0x1c0] ss:$16 sps:$4 sm:$0xff]   ;;  %v1163_v44 = vld [vmem:[%s1631_s0 + $0x1ec] ss:$16 sps:$4 sm:$0xff]   ;;  %v1161_v45 = vld [vmem:[%s1631_s0 + $0x1e8] ss:$16 sps:$4 sm:$0xff]  }
  0x10   :  { %685 = vmatpush1.bf16.msra.mxu1 %v1119_v15  ;;  %544 = vmatprep.subr.bf16.mxu0 %v1123_v18  ;;  %v1164_v46 = vld [vmem:[%s1631_s0 + $0x1a0] ss:$16 sps:$4 sm:$0xff]   ;;  %v1165_v47 = vld [vmem:[%s1631_s0 + $0x184] ss:$16 sps:$4 sm:$0xff]   ;;  %v1169_v48 = vld [vmem:[%s1631_s0 + $0x1cc] ss:$16 sps:$4 sm:$0xff]  }
  0x11   :  { %686 = vmatprep.subr.bf16.mxu1 %v1127_v19  ;;  %v1403_v49 = vld [vmem:[%s1632_s1 + $0x38] ss:$12 sps:$4 sm:$0xff]   ;;  %v1170_v51 = vld [vmem:[%s1631_s0 + $0x180] ss:$16 sps:$4 sm:$0xff]   ;;  %v1176_v53 = vld [vmem:[%s1631_s0 + $0x1ac] ss:$16 sps:$4 sm:$0xff]  }
  0x12   :  { %v1167_v50 = vld [vmem:[%s1631_s0 + $0x1c8] ss:$16 sps:$4 sm:$0xff]   ;;  %v1171_v52 = vld [vmem:[%s1631_s0 + $0x164] ss:$16 sps:$4 sm:$0xff]   ;;  %v1177_v56 = vld [vmem:[%s1631_s0 + $0x160] ss:$16 sps:$4 sm:$0xff]  }
  0x13   :  { %545 = vmatpush1.bf16.msra.mxu0 %v1128_v21  ;;  %1045 = vmatmul.mubr.msk.bf16.gmra.mxu1 %vm523_vm0, %v1371_v40  ;;  %v1174_v54 = vld [vmem:[%s1631_s0 + $0x1a8] ss:$16 sps:$4 sm:$0xff]   ;;  %v1199_v55 = vld [vmem:[%s1632_s1 + $0x4] ss:$12 sps:$4 sm:$0xff]   ;;  %v1182_v58 = vld [vmem:[%s1631_s0 + $0x18c] ss:$16 sps:$4 sm:$0xff]  }
  0x14   :  { %687 = vmatpush1.bf16.msra.mxu1 %v1125_v20  ;;  %546 = vmatprep.subr.bf16.mxu0 %v1129_v22  ;;  %v1178_v57 = vld [vmem:[%s1631_s0 + $0x144] ss:$16 sps:$4 sm:$0xff]   ;;  %v1438_v59 = vld [vmem:[%s1632_s1 + $0x50] ss:$12 sps:$4 sm:$0xff]   ;;  %v1180_v60 = vld [vmem:[%s1631_s0 + $0x188] ss:$16 sps:$4 sm:$0xff]  }
  0x15   :  { %688 = vmatprep.subr.bf16.mxu1 %v1133_v23  ;;  %661 = vmatprep.mubr.bf16.mxu1 %v1222_v1  ;;  %v1183_v61 = vld [vmem:[%s1631_s0 + $0x140] ss:$16 sps:$4 sm:$0xff]   ;;  %v1184_v62 = vld [vmem:[%s1631_s0 + $0x124] ss:$16 sps:$4 sm:$0xff]   ;;  %v1189_v63 = vld [vmem:[%s1631_s0 + $0x16c] ss:$16 sps:$4 sm:$0xff]  }
  0x16   :  { %568 = vmatprep.mubr.bf16.mxu0 %v1199_v55  ;;  %v1187_v0 = vld [vmem:[%s1631_s0 + $0x168] ss:$16 sps:$4 sm:$0xff]   ;;  %v1190_v2 = vld [vmem:[%s1631_s0 + $0x120] ss:$16 sps:$4 sm:$0xff]   ;;  %v1191_v3 = vld [vmem:[%s1631_s0 + $0x104] ss:$16 sps:$4 sm:$0xff]  }
  0x17   :  { %547 = vmatpush1.bf16.msra.mxu0 %v1134_v25  ;;  %v1195_v4 = vld [vmem:[%s1631_s0 + $0x14c] ss:$16 sps:$4 sm:$0xff]   ;;  %v852_v5 = vld [vmem:[%s1633_s2] sm:$0xff]  ;;  %v854_v6 = vld [vmem:[%s1633_s2 + $0x10] sm:$0xff] }
  0x18   :  { %689 = vmatpush1.bf16.msra.mxu1 %v1131_v24  ;;  %548 = vmatprep.subr.bf16.mxu0 %v1135_v26  ;;  %v853_v7 = vld [vmem:[%s1633_s2 + $0x8] sm:$0xff]  ;;  %v855_v8 = vld [vmem:[%s1633_s2 + $0x18] sm:$0xff]  ;;  %v1196_v10 = vld [vmem:[%s1631_s0 + $0x100] ss:$16 sps:$4 sm:$0xff]  }
  0x19   :  { %690 = vmatprep.subr.bf16.mxu1 %v1139_v27  ;;  %862 = vperm.xlu0 %1096, %v852_v5   ;;  %v1193_v9 = vld [vmem:[%s1631_s0 + $0x148] ss:$16 sps:$4 sm:$0xff]   ;;  %v1203_v11 = vld [vmem:[%s1631_s0 + $0x12c] ss:$16 sps:$4 sm:$0xff]   ;;  %v856_v15 = vld [vmem:[%s1633_s2 + $0x20] sm:$0xff] }
  0x1a   :  { %872 = vperm.xlu1 %1097, %v854_v6   ;;  %v1206_v12 = vld [vmem:[%s1631_s0 + $0x22c] ss:$16 sps:$4 sm:$0xff]   ;;  %v1201_v17 = vld [vmem:[%s1631_s0 + $0x128] ss:$16 sps:$4 sm:$0xff]   ;;  %v858_v22 = vld [vmem:[%s1633_s2 + $0x30] sm:$0xff] }
  0x1b   :  { %549 = vmatpush1.bf16.msra.mxu0 %v1140_v29  ;;  %1046 = vmatmul.mubr.msk.bf16.gmra.mxu1 %vm523_vm0, %v1403_v49  ;;  %v1197_v14 = vld [vmem:[%s1632_s1] ss:$12 sps:$4 sm:$0xff]   ;;  %v1204_v18 = vld [vmem:[%s1631_s0 + $0x228] ss:$16 sps:$4 sm:$0xff]  }
  0x1c   :  { %691 = vmatpush1.bf16.msra.mxu1 %v1137_v28  ;;  %550 = vmatprep.subr.bf16.mxu0 %v1141_v30  ;;  %v857_v16 = vld [vmem:[%s1633_s2 + $0x28] sm:$0xff]  ;;  %v859_v25 = vld [vmem:[%s1633_s2 + $0x38] sm:$0xff]  ;;  %v1213_v27 = vld [vmem:[%s1632_s1 + $0x34] ss:$12 sps:$4 sm:$0xff]  }
  0x1d   :  { %692 = vmatprep.subr.bf16.mxu1 %v1145_v31  ;;  %671 = vmatprep.mubr.bf16.mxu1 %v1222_v1  ;;  %v1209_v19 = vld [vmem:[%s1631_s0 + $0x10c] ss:$16 sps:$4 sm:$0xff]   ;;  %v1207_v23 = vld [vmem:[%s1631_s0 + $0x108] ss:$16 sps:$4 sm:$0xff]  }
  0x1e   :  { %867 = vperm.xlu0 %1096, %v853_v7   ;;  %877 = vperm.xlu1 %1097, %v855_v8   ;;  %v1210_v20 = vld [vmem:[%s1632_s1 + $0x1c] ss:$12 sps:$4 sm:$0xff]   ;;  %v1212_v26 = vld [vmem:[%s1632_s1 + $0x18] ss:$12 sps:$4 sm:$0xff]  }
  0x1f   :  { %551 = vmatpush1.bf16.msra.mxu0 %v1146_v33  ;;  %v1218_v21 = vld [vmem:[%s1631_s0 + $0x20c] ss:$16 sps:$4 sm:$0xff]   ;;  %v1216_v24 = vld [vmem:[%s1631_s0 + $0x208] ss:$16 sps:$4 sm:$0xff]  }
  0x20   :  { %693 = vmatpush1.bf16.msra.mxu1 %v1143_v32  ;;  %552 = vmatprep.subr.bf16.mxu0 %v1147_v34  ;;  %v1215_v28 = vld [vmem:[%s1632_s1 + $0x30] ss:$12 sps:$4 sm:$0xff]   ;;  %v1219_v29 = vld [vmem:[%s1632_s1 + $0x4c] ss:$12 sps:$4 sm:$0xff]   ;;  %v1221_v30 = vld [vmem:[%s1632_s1 + $0x48] ss:$12 sps:$4 sm:$0xff]  }
  0x21   :  { %694 = vmatprep.subr.bf16.mxu1 %v1151_v35 }
  0x22   :  { %882 = vperm.xlu0 %1096, %v856_v15   ;;  %887 = vperm.xlu1 %1097, %v857_v16  }
  0x23   :  { %553 = vmatpush2.bf16.msra.mxu0 %v1152_v37  ;;  %1047 = vmatmul.mubr.msk.bf16.gmra.mxu1 %vm523_vm0, %v1438_v59 }
  0x24   :  { %695 = vmatpush1.bf16.msra.mxu1 %v1149_v36  ;;  %554 = vmatprep.subr.bf16.mxu0 %v1153_v38 }
  0x25   :  { %696 = vmatprep.subr.bf16.mxu1 %v1157_v39  ;;  %714 = vmatprep.mubr.bf16.mxu1 %v1199_v55 }
  0x26   :  { %892 = vperm.xlu0 %1096, %v858_v22   ;;  %897 = vperm.xlu1 %1097, %v859_v25  }
  0x27   :  { %555 = vmatpush2.bf16.msra.mxu0 %v1158_v42 }
  0x28   :  { %697 = vmatpush1.bf16.msra.mxu1 %v1155_v41  ;;  %556 = vmatprep.subr.bf16.mxu0 %v1159_v43 }
  0x29   :  { %698 = vmatprep.subr.bf16.mxu1 %v1163_v44 }
  0x2b   :  { %557 = vmatpush2.bf16.msra.mxu0 %v1164_v46 }
  0x2c   :  { %699 = vmatpush2.bf16.msra.mxu1 %v1161_v45  ;;  %558 = vmatprep.subr.bf16.mxu0 %v1165_v47 }
  0x2d   :  { %700 = vmatprep.subr.bf16.mxu1 %v1169_v48 }
  0x2f   :  { %559 = vmatpush2.bf16.msra.mxu0 %v1170_v51 }
  0x30   :  { %701 = vmatpush2.bf16.msra.mxu1 %v1167_v50  ;;  %560 = vmatprep.subr.bf16.mxu0 %v1171_v52 }
  0x31   :  { %702 = vmatprep.subr.bf16.mxu1 %v1176_v53 }
  0x33   :  { %561 = vmatpush2.bf16.msra.mxu0 %v1177_v56 }
  0x34   :  { %703 = vmatpush2.bf16.msra.mxu1 %v1174_v54  ;;  %562 = vmatprep.subr.bf16.mxu0 %v1178_v57 }
  0x35   :  { %704 = vmatprep.subr.bf16.mxu1 %v1182_v58 }
  0x37   :  { %563 = vmatpush2.bf16.msra.mxu0 %v1183_v61 }
  0x38   :  { %705 = vmatpush2.bf16.msra.mxu1 %v1180_v60  ;;  %564 = vmatprep.subr.bf16.mxu0 %v1184_v62 }
  0x39   :  { %706 = vmatprep.subr.bf16.mxu1 %v1189_v63 }
  0x3b   :  { %565 = vmatpush2.bf16.msra.mxu0 %v1190_v2 }
  0x3c   :  { %707 = vmatpush2.bf16.msra.mxu1 %v1187_v0  ;;  %566 = vmatprep.subr.bf16.mxu0 %v1191_v3 }
  0x3d   :  { %708 = vmatprep.subr.bf16.mxu1 %v1195_v4 }
  0x3f   :  { %567 = vmatpush2.bf16.msra.mxu0 %v1196_v10 }
  0x40   :  { %709 = vmatpush2.bf16.msra.mxu1 %v1193_v9  ;;  %767 = vmatprep.subr.bf16.mxu0 %v1206_v12 }
  0x41   :  { %710 = vmatprep.subr.bf16.mxu1 %v1203_v11 }
  0x42   :  { %569 = vmatmul.mubr.bf16.vlgmr.msra.gmra.mxu0 %v1197_v14 }
  0x43   :  { %768 = vmatpush1.bf16.msra.mxu0 %v1204_v18  ;;  %578 = vmatprep.mubr.bf16.mxu0 %v1210_v20 }
  0x44   :  { %711 = vmatpush2.bf16.msra.mxu1 %v1201_v17  ;;  %769 = vmatprep.subr.bf16.mxu0 %v1218_v21 }
  0x45   :  { %712 = vmatprep.subr.bf16.mxu1 %v1209_v19 }
  0x47   :  { %770 = vmatpush1.bf16.msra.mxu0 %v1216_v24 }
  0x48   :  { %713 = vmatpush2.bf16.msra.mxu1 %v1207_v23 }
  0x49   :  { %1091 = vmatprep.subr.bf16.mxu1 %v1206_v12 }
  0x4a   :  { %579 = vmatmul.mubr.bf16.gmra.mxu0 %v1212_v26 }
  0x4b   :  { %715 = vmatmul.mubr.bf16.vlgmr.msra.gmra.mxu1 %v1197_v14  ;;  %588 = vmatprep.mubr.bf16.mxu0 %v1213_v27 }
  0x4c   :  { %724 = vmatprep.mubr.bf16.mxu1 %v1210_v20  ;;  %1093 = vmatpush1.bf16.msra.mxu1 %v1204_v18 }
  0x4d   :  { %1092 = vmatprep.subr.bf16.mxu1 %v1218_v21 }
  0x50   :  { %1094 = vmatpush1.bf16.msra.mxu1 %v1216_v24 }
  0x52   :  { %589 = vmatmul.mubr.bf16.gmra.mxu0 %v1215_v28 }
  0x53   :  { %725 = vmatmul.mubr.bf16.gmra.mxu1 %v1212_v26  ;;  %598 = vmatprep.mubr.bf16.mxu0 %v1219_v29 }
  0x54   :  { %734 = vmatprep.mubr.bf16.mxu1 %v1213_v27 }
  0x5a   :  { %599 = vmatmul.mubr.bf16.gmra.mxu0 %v1221_v30 }
  0x5b   :  { %735 = vmatmul.mubr.bf16.gmra.mxu1 %v1215_v28  ;;  %787 = vmatprep.mubr.bf16.mxu0 %v1222_v1 }
  0x5c   :  { %744 = vmatprep.mubr.bf16.mxu1 %v1219_v29 }
  0x62   :  { %1048 = vmatmul.mubr.msk.bf16.vlgmr.msra.gmra.mxu0 %vm523_vm0, %v1285_v13 }
  0x63   :  { %745 = vmatmul.mubr.bf16.gmra.mxu1 %v1221_v30  ;;  %797 = vmatprep.mubr.bf16.mxu0 %v1222_v1 }
  0x64   :  { %817 = vmatprep.mubr.bf16.mxu1 %v1222_v1 }
  0x6a   :  { %1049 = vmatmul.mubr.msk.bf16.gmra.mxu0 %vm523_vm0, %v1371_v40 }
  0x6b   :  { %1051 = vmatmul.mubr.msk.bf16.vlgmr.msra.gmra.mxu1 %vm523_vm0, %v1438_v59  ;;  %807 = vmatprep.mubr.bf16.mxu0 %v1222_v1 }
  0x72   :  { %1050 = vmatmul.mubr.msk.bf16.gmra.mxu0 %vm523_vm0, %v1403_v49 }
  0x94   :  { %v863_v8 = vpop.permute.xlu0 %862 }
  0x95   :  { %v1593_v15 = vpop.permute.xlu1 %872 }
  0x99   :  { %v868_v21 = vpop.permute.xlu0 %867 }
  0xcb   :  { %v643_v31 = vpop.f32.mrf.mxu1 }
  0xcd   :  { %v645_v32 = vpop.f32.mrf.mxu1 }
  0xcf   :  { %v647_v33 = vpop.f32.mrf.mxu1 }
  0xd1   :  { %v649_v34 = vpop.f32.mrf.mxu1 }
  0xd3   :  { %v1553_v13 = vpop.f32.mrf.mxu1 }
  0xd5   :  { %v655_v35 = vpop.f32.mrf.mxu1 }
  0xd7   :  { %v1555_v36 = vpop.f32.mrf.mxu1 }
  0xd9   :  { %v1557_v37 = vpop.f32.mrf.mxu1 }
  0xdb   :  { %v1559_v38 = vpop.f32.mrf.mxu1 }
  0xdd   :  { %v1561_v39 = vpop.f32.mrf.mxu1 }
  0xdf   :  { %v1563_v40 = vpop.f32.mrf.mxu1 }
  0xe0   :  { %1635 = vst [vmem:[#allocation2_spill] sm:$0xff] %v1563_v40 }
  0xe1   :  { %v1565_v1 = vpop.f32.mrf.mxu1 }
  0xe2   :  { %1636 = vst [vmem:[#allocation3_spill] sm:$0xff] %v1565_v1 }
  0xe3   :  { %v1567_v41 = vpop.f32.mrf.mxu1 }
  0xe5   :  { %v675_v42 = vpop.f32.mrf.mxu1 }
  0xe7   :  { %v1569_v44 = vpop.f32.mrf.mxu1 }
  0xe9   :  { %v1571_v47 = vpop.f32.mrf.mxu1 }
 0x102   :  { %v570_v43 = vpop.f32.mrf.mxu0 }
 0x103   :  { %v644_v18 = vadd.f32 %v643_v31, %v570_v43 }
 0x104   :  { %v572_v45 = vpop.f32.mrf.mxu0 }
 0x105   :  { %v646_v14 = vadd.f32 %v645_v32, %v572_v45  ;;  %v878_v32 = vpop.permute.xlu1 %877 }
 0x106   :  { %v574_v46 = vpop.f32.mrf.mxu0 }
 0x107   :  { %v828_v24 = vmax.f32 %v644_v18, %v646_v14  ;;  %v648_v29 = vadd.f32 %v647_v33, %v574_v46 }
 0x108   :  { %v576_v48 = vpop.f32.mrf.mxu0 }
 0x109   :  { %v650_v25 = vadd.f32 %v649_v34, %v576_v48 }
 0x10a   :  { %v580_v49 = vpop.f32.mrf.mxu0 }
 0x10b   :  { %v716_v50 = vpop.f32.mrf.mxu1  ;;  %v829_v31 = vmax.f32 %v648_v29, %v650_v25  ;;  %v1640_v29 = vld [vmem:[#allocation3_spill] sm:$0xff] }
 0x10c   :  { %v582_v51 = vpop.f32.mrf.mxu0 }
 0x10d   :  { %v718_v52 = vpop.f32.mrf.mxu1  ;;  %v656_v45 = vadd.f32 %v655_v35, %v582_v51 }
 0x10e   :  { %v584_v53 = vpop.f32.mrf.mxu0 }
 0x10f   :  { %v720_v54 = vpop.f32.mrf.mxu1 }
 0x110   :  { %v586_v55 = vpop.f32.mrf.mxu0 }
 0x111   :  { %v722_v56 = vpop.f32.mrf.mxu1  ;;  %v660_v51 = vadd.f32 %v1557_v37, %v586_v55 }
 0x112   :  { %v1573_v57 = vpop.f32.mrf.mxu0 }
 0x113   :  { %v726_v58 = vpop.f32.mrf.mxu1 }
 0x114   :  { %v1575_v59 = vpop.f32.mrf.mxu0 }
 0x115   :  { %v728_v60 = vpop.f32.mrf.mxu1 }
 0x116   :  { %v1577_v61 = vpop.f32.mrf.mxu0 }
 0x117   :  { %1637 = vst [vmem:[#allocation4_spill] sm:$0xff] %v1577_v61  ;;  %v1579_v62 = vpop.f32.mrf.mxu1 }
 0x118   :  { %v1581_v63 = vpop.f32.mrf.mxu0 }
 0x119   :  { %v1583_v0 = vpop.f32.mrf.mxu1 }
 0x11a   :  { %v600_v2 = vpop.f32.mrf.mxu0 }
 0x11b   :  { %v1585_v3 = vpop.f32.mrf.mxu1  ;;  %v674_v34 = vadd.f32 %v1567_v41, %v600_v2 }
 0x11c   :  { %v602_v4 = vpop.f32.mrf.mxu0 }
 0x11d   :  { %v1587_v5 = vpop.f32.mrf.mxu1  ;;  %v676_v40 = vadd.f32 %v675_v42, %v602_v4  ;;  %v658_v42 = vadd.f32 %v1555_v36, %v584_v53 }
 0x11e   :  { %v604_v6 = vpop.f32.mrf.mxu0 }
 0x11f   :  { %v1589_v7 = vpop.f32.mrf.mxu1  ;;  %v834_v4 = vmax.f32 %v674_v34, %v676_v40  ;;  %v831_v18 = vmax.f32 %v658_v42, %v660_v51 }
 0x120   :  { %1638 = vst [vmem:[#allocation5_spill] sm:$0xff] %v1589_v7  ;;  %v606_v9 = vpop.f32.mrf.mxu0 }
 0x121   :  { %v1591_v10 = vpop.f32.mrf.mxu1 }
 0x122   :  { %1639 = vst [vmem:[#allocation6_spill] sm:$0xff] %v1591_v10  ;;  %v789_v12 = vpop.f32.mrf.mxu0 }
 0x123   :  { %v746_v11 = vpop.f32.mrf.mxu1  ;;  %v790_v19 = vadd.f32 %v789_v12, %v716_v50  ;;  %v1595_v50 = vpop.permute.xlu0 %882 }
 0x124   :  { %v791_v17 = vpop.f32.mrf.mxu0 }
 0x125   :  { %v748_v16 = vpop.f32.mrf.mxu1  ;;  %v792_v20 = vadd.f32 %v791_v17, %v718_v52  ;;  %v654_v52 = vadd.f32 %v1553_v13, %v580_v49  ;;  %v680_v13 = vadd.f32 %v1571_v47, %v606_v9  ;;  %v666_v47 = vadd.f32 %v1561_v39, %v1575_v59 }
 0x126   :  { %v793_v23 = vpop.f32.mrf.mxu0 }
 0x127   :  { %v750_v22 = vpop.f32.mrf.mxu1  ;;  %v836_v26 = vmax.f32 %v790_v19, %v792_v20  ;;  %v794_v10 = vadd.f32 %v793_v23, %v720_v54  ;;  %v830_v35 = vmax.f32 %v654_v52, %v656_v45  ;;  %v893_v55 = vpop.permute.xlu0 %892  ;;  %v1641_v45 = vld [vmem:[#allocation4_spill] sm:$0xff] }
 0x128   :  { %v795_v28 = vpop.f32.mrf.mxu0 }
 0x129   :  { %v752_v27 = vpop.f32.mrf.mxu1  ;;  %v844_v30 = vmax.f32 %v828_v24, %v836_v26  ;;  %v796_v7 = vadd.f32 %v795_v28, %v722_v56 }
 0x12a   :  { %v799_v61 = vpop.f32.mrf.mxu0 }
 0x12b   :  { %v819_v1 = vpop.f32.mrf.mxu1  ;;  %v837_v43 = vmax.f32 %v794_v10, %v796_v7  ;;  %v900_v48 = vadd.f32 %v863_v8, %v844_v30  ;;  %v800_v12 = vadd.f32 %v799_v61, %v726_v58  ;;  %v888_v58 = vpop.permute.xlu1 %887  ;;  %v678_v61 = vadd.f32 %v1569_v44, %v604_v6 }
 0x12c   :  { %v801_v14 = vpop.f32.mrf.mxu0  ;;  %v820_v54 = vadd.f32 %v819_v1, %v746_v11 }
 0x12d   :  { %v821_v33 = vpop.f32.mrf.mxu1  ;;  %v845_v46 = vmax.f32 %v829_v31, %v837_v43  ;;  %v802_v56 = vadd.f32 %v801_v14, %v728_v60  ;;  %v908_v8 = vmax.f32 %v900_v48, 0.0  ;;  %v835_v20 = vmax.f32 %v678_v61, %v680_v13  ;;  %v1642_v31 = vld [vmem:[#allocation2_spill] sm:$0xff]  ;;  %v1643_v48 = vld [vmem:[#allocation5_spill] sm:$0xff] }
 0x12e   :  { %v822_v17 = vadd.f32 %v821_v33, %v748_v16  ;;  %v803_v7 = vpop.f32.mrf.mxu0  ;;  %v668_v43 = vadd.f32 %v1642_v31, %v1641_v45 }
 0x12f   :  { %v823_v10 = vpop.f32.mrf.mxu1  ;;  %v901_v49 = vadd.f32 %v868_v21, %v845_v46  ;;  %v838_v41 = vmax.f32 %v800_v12, %v802_v56  ;;  %v804_v1 = vadd.f32 %v803_v7, %v1579_v62  ;;  %v664_v62 = vadd.f32 %v1559_v38, %v1573_v57  ;;  %v1644_v46 = vld [vmem:[#allocation6_spill] sm:$0xff] }
 0x130   :  { %v842_v2 = vmax.f32 %v820_v54, %v822_v17  ;;  %v824_v60 = vadd.f32 %v823_v10, %v750_v22  ;;  %v805_v11 = vpop.f32.mrf.mxu0  ;;  %v670_v38 = vadd.f32 %v1640_v29, %v1581_v63 }
 0x131   :  { %v825_v16 = vpop.f32.mrf.mxu1  ;;  %v909_v36 = vmax.f32 %v901_v49, 0.0  ;;  %v846_v53 = vmax.f32 %v830_v35, %v838_v41  ;;  %v806_v37 = vadd.f32 %v805_v11, %v1583_v0  ;;  %v832_v26 = vmax.f32 %v664_v62, %v666_v47 }
 0x132   :  { %v826_v40 = vadd.f32 %v825_v16, %v752_v27  ;;  %v850_v9 = vmax.f32 %v834_v4, %v842_v2  ;;  %v809_v19 = vpop.f32.mrf.mxu0  ;;  %v898_v27 = vpop.permute.xlu1 %897  ;;  %v833_v56 = vmax.f32 %v668_v43, %v670_v38 }
 0x133   :  { %v1071_v44 = vpack.c.bf16 %v909_v36, %v908_v8  ;;  %v839_v6 = vmax.f32 %v804_v1, %v806_v37  ;;  %v902_v22 = vadd.f32 %v1593_v15, %v846_v53  ;;  %v810_v39 = vadd.f32 %v809_v19, %v1585_v3 }
 0x134   :  { %v843_v21 = vmax.f32 %v824_v60, %v826_v40  ;;  %v906_v23 = vadd.f32 %v893_v55, %v850_v9  ;;  %v811_v24 = vpop.f32.mrf.mxu0 }
 0x135   :  { %1072 = vst [vmem:[%s1634_s3] sm:$0xff] %v1071_v44   ;;  %v847_v0 = vmax.f32 %v831_v18, %v839_v6  ;;  %v812_v25 = vadd.f32 %v811_v24, %v1587_v5  ;;  %v910_v52 = vmax.f32 %v902_v22, 0.0 }
 0x136   :  { %v851_v59 = vmax.f32 %v835_v20, %v843_v21  ;;  %v813_v28 = vpop.f32.mrf.mxu0  ;;  %v914_v34 = vmax.f32 %v906_v23, 0.0 }
 0x137   :  { %v903_v57 = vadd.f32 %v878_v32, %v847_v0  ;;  %v840_v30 = vmax.f32 %v810_v39, %v812_v25  ;;  %v814_v12 = vadd.f32 %v813_v28, %v1643_v48 }
 0x138   :  { %v907_v15 = vadd.f32 %v898_v27, %v851_v59  ;;  %v815_v3 = vpop.f32.mrf.mxu0 }
 0x139   :  { %v911_v14 = vmax.f32 %v903_v57, 0.0  ;;  %v848_v5 = vmax.f32 %v832_v26, %v840_v30  ;;  %v816_v54 = vadd.f32 %v815_v3, %v1644_v46 }
 0x13a   :  { %v915_v33 = vmax.f32 %v907_v15, 0.0 }
 0x13b   :  { %v1076_v17 = vpack.c.bf16 %v911_v14, %v910_v52  ;;  %v841_v63 = vmax.f32 %v814_v12, %v816_v54  ;;  %v904_v32 = vadd.f32 %v1595_v50, %v848_v5 }
 0x13c   :  { %v1086_v35 = vpack.c.bf16 %v915_v33, %v914_v34 }
 0x13d   :  { %1088 = vst [vmem:[%s1634_s3 + $0x8] sm:$0xff] %v1076_v17   ;;  %v849_v42 = vmax.f32 %v833_v56, %v841_v63  ;;  %v912_v4 = vmax.f32 %v904_v32, 0.0 }
 0x13e   :  { %1090 = vst [vmem:[%s1634_s3 + $0x18] sm:$0xff] %v1086_v35  }
 0x13f   :  { %v905_v51 = vadd.f32 %v888_v58, %v849_v42 }
 0x141   :  { %v913_v7 = vmax.f32 %v905_v51, 0.0 }
 0x143   :  { %v1081_v10 = vpack.c.bf16 %v913_v7, %v912_v4 }
 0x145   :  { %1089 = vst [vmem:[%s1634_s3 + $0x10] sm:$0xff] %v1081_v10  }

// kernel: dcnn_forward.7
= control target key start
LH: loop header
LB: loop body
LE: loop exit
PB: predicated region body
PF: predicated region fallthrough
CT: control target
= control target key end

     0   :  { %s4064_s0 = inlined_call_operand.vmem [shape: bf16[8,1024], index: 0, kind: input, shape index: {}]   ;;  %s4065_s1 = inlined_call_operand.vmem [shape: bf16[1024,512], index: 1, kind: input, shape index: {}]   ;;  %s4066_s2 = inlined_call_operand.vmem [shape: f32[1,512], index: 2, kind: input, shape index: {}]   ;;  %s4067_s3 = inlined_call_operand.vmem [shape: bf16[512,10], index: 3, kind: input, shape index: {}]   ;;  %s4068_s4 = inlined_call_operand.vmem [shape: f32[1,10], index: 4, kind: input, shape index: {}]   ;;  %s4069_s5 = inlined_call_operand.hbm [shape: f32[8,10], index: 5, kind: output, shape index: {}]  }
   0x1   :  { %v2649_v0 = vld [vmem:[%s4065_s1 + $0xe4] ss:$16 sps:$4 sm:$0xff]   ;;  %v2653_v2 = vld [vmem:[%s4065_s1 + $0xe0] ss:$16 sps:$4 sm:$0xff]   ;;  %v23_v48 = vld [vmem:[%s4064_s0 + $0x8] sm:$0xff] }
   0x2   :  { %v2651_v1 = vld [vmem:[%s4065_s1 + $0x2e4] ss:$16 sps:$4 sm:$0xff]   ;;  %1612 = vmatprep.subr.bf16.mxu0 %v2649_v0  ;;  %v2654_v3 = vld [vmem:[%s4065_s1 + $0x2e0] ss:$16 sps:$4 sm:$0xff]   ;;  %v3278_v51 = vcombine.high %v23_v48, %v23_v48 }
   0x3   :  { %1653 = vmatprep.subr.bf16.mxu1 %v2651_v1  ;;  %v2655_v4 = vld [vmem:[%s4065_s1 + $0xc4] ss:$16 sps:$4 sm:$0xff]   ;;  %1613 = vmatpush1.bf16.msra.mxu0 %v2653_v2  ;;  %v2659_v6 = vld [vmem:[%s4065_s1 + $0xc0] ss:$16 sps:$4 sm:$0xff]  }
   0x4   :  { %1654 = vmatpush1.bf16.msra.mxu1 %v2654_v3  ;;  %v2657_v5 = vld [vmem:[%s4065_s1 + $0x2c4] ss:$16 sps:$4 sm:$0xff]   ;;  %1614 = vmatprep.subr.bf16.mxu0 %v2655_v4  ;;  %v2660_v7 = vld [vmem:[%s4065_s1 + $0x2c0] ss:$16 sps:$4 sm:$0xff]  }
   0x5   :  { %1655 = vmatprep.subr.bf16.mxu1 %v2657_v5  ;;  %v2661_v8 = vld [vmem:[%s4065_s1 + $0xa4] ss:$16 sps:$4 sm:$0xff]   ;;  %v2665_v10 = vld [vmem:[%s4065_s1 + $0xa0] ss:$16 sps:$4 sm:$0xff]   ;;  %1685 = vmatprep.mubr.bf16.mxu1 %v3278_v51 }
   0x6   :  { %v2663_v9 = vld [vmem:[%s4065_s1 + $0x2a4] ss:$16 sps:$4 sm:$0xff]   ;;  %v2666_v11 = vld [vmem:[%s4065_s1 + $0x2a0] ss:$16 sps:$4 sm:$0xff]  }
   0x7   :  { %1615 = vmatpush1.bf16.msra.mxu0 %v2659_v6  ;;  %v2667_v12 = vld [vmem:[%s4065_s1 + $0x84] ss:$16 sps:$4 sm:$0xff]   ;;  %v2671_v14 = vld [vmem:[%s4065_s1 + $0x80] ss:$16 sps:$4 sm:$0xff]  }
   0x8   :  { %1656 = vmatpush1.bf16.msra.mxu1 %v2660_v7  ;;  %1616 = vmatprep.subr.bf16.mxu0 %v2661_v8  ;;  %v2669_v13 = vld [vmem:[%s4065_s1 + $0x284] ss:$16 sps:$4 sm:$0xff]   ;;  %v2672_v15 = vld [vmem:[%s4065_s1 + $0x280] ss:$16 sps:$4 sm:$0xff]   ;;  %v3338_v7 = vcombine.low %v23_v48, %v23_v48 }
   0x9   :  { %1657 = vmatprep.subr.bf16.mxu1 %v2663_v9  ;;  %v2673_v16 = vld [vmem:[%s4065_s1 + $0x64] ss:$16 sps:$4 sm:$0xff]   ;;  %v2677_v18 = vld [vmem:[%s4065_s1 + $0x60] ss:$16 sps:$4 sm:$0xff]  }
   0xa   :  { %v2675_v17 = vld [vmem:[%s4065_s1 + $0x264] ss:$16 sps:$4 sm:$0xff]   ;;  %v2678_v19 = vld [vmem:[%s4065_s1 + $0x260] ss:$16 sps:$4 sm:$0xff]  }
   0xb   :  { %1617 = vmatpush1.bf16.msra.mxu0 %v2665_v10  ;;  %v2679_v20 = vld [vmem:[%s4065_s1 + $0x44] ss:$16 sps:$4 sm:$0xff]   ;;  %v2683_v22 = vld [vmem:[%s4065_s1 + $0x40] ss:$16 sps:$4 sm:$0xff]  }
   0xc   :  { %1658 = vmatpush1.bf16.msra.mxu1 %v2666_v11  ;;  %1618 = vmatprep.subr.bf16.mxu0 %v2667_v12  ;;  %v2681_v21 = vld [vmem:[%s4065_s1 + $0x244] ss:$16 sps:$4 sm:$0xff]   ;;  %v2684_v23 = vld [vmem:[%s4065_s1 + $0x240] ss:$16 sps:$4 sm:$0xff]  }
   0xd   :  { %1659 = vmatprep.subr.bf16.mxu1 %v2669_v13  ;;  %v2685_v24 = vld [vmem:[%s4065_s1 + $0x24] ss:$16 sps:$4 sm:$0xff]   ;;  %v2689_v26 = vld [vmem:[%s4065_s1 + $0x20] ss:$16 sps:$4 sm:$0xff]  }
   0xe   :  { %v2687_v25 = vld [vmem:[%s4065_s1 + $0x224] ss:$16 sps:$4 sm:$0xff]   ;;  %v2690_v27 = vld [vmem:[%s4065_s1 + $0x220] ss:$16 sps:$4 sm:$0xff]  }
   0xf   :  { %1619 = vmatpush1.bf16.msra.mxu0 %v2671_v14  ;;  %v2691_v28 = vld [vmem:[%s4065_s1 + $0x4] ss:$16 sps:$4 sm:$0xff]   ;;  %v2695_v30 = vld [vmem:[%s4065_s1] ss:$16 sps:$4 sm:$0xff]  }
  0x10   :  { %1660 = vmatpush1.bf16.msra.mxu1 %v2672_v15  ;;  %1620 = vmatprep.subr.bf16.mxu0 %v2673_v16  ;;  %v2693_v29 = vld [vmem:[%s4065_s1 + $0x204] ss:$16 sps:$4 sm:$0xff]   ;;  %v2696_v31 = vld [vmem:[%s4065_s1 + $0x200] ss:$16 sps:$4 sm:$0xff]  }
  0x11   :  { %1661 = vmatprep.subr.bf16.mxu1 %v2675_v17  ;;  %v2697_v32 = vld [vmem:[%s4065_s1 + $0x1e4] ss:$16 sps:$4 sm:$0xff]   ;;  %v2701_v34 = vld [vmem:[%s4065_s1 + $0x1e0] ss:$16 sps:$4 sm:$0xff]  }
  0x12   :  { %v2699_v33 = vld [vmem:[%s4065_s1 + $0x3e4] ss:$16 sps:$4 sm:$0xff]   ;;  %v2702_v35 = vld [vmem:[%s4065_s1 + $0x3e0] ss:$16 sps:$4 sm:$0xff]  }
  0x13   :  { %1621 = vmatpush1.bf16.msra.mxu0 %v2677_v18  ;;  %v2703_v36 = vld [vmem:[%s4065_s1 + $0x1c4] ss:$16 sps:$4 sm:$0xff]   ;;  %v2707_v38 = vld [vmem:[%s4065_s1 + $0x1c0] ss:$16 sps:$4 sm:$0xff]  }
  0x14   :  { %1662 = vmatpush1.bf16.msra.mxu1 %v2678_v19  ;;  %1622 = vmatprep.subr.bf16.mxu0 %v2679_v20  ;;  %v2705_v37 = vld [vmem:[%s4065_s1 + $0x3c4] ss:$16 sps:$4 sm:$0xff]   ;;  %v2708_v39 = vld [vmem:[%s4065_s1 + $0x3c0] ss:$16 sps:$4 sm:$0xff]  }
  0x15   :  { %1663 = vmatprep.subr.bf16.mxu1 %v2681_v21  ;;  %v2709_v40 = vld [vmem:[%s4065_s1 + $0x1a4] ss:$16 sps:$4 sm:$0xff]   ;;  %v2713_v42 = vld [vmem:[%s4065_s1 + $0x1a0] ss:$16 sps:$4 sm:$0xff]  }
  0x16   :  { %v2711_v41 = vld [vmem:[%s4065_s1 + $0x3a4] ss:$16 sps:$4 sm:$0xff]   ;;  %v2714_v43 = vld [vmem:[%s4065_s1 + $0x3a0] ss:$16 sps:$4 sm:$0xff]  }
  0x17   :  { %1623 = vmatpush1.bf16.msra.mxu0 %v2683_v22  ;;  %v2715_v44 = vld [vmem:[%s4065_s1 + $0x184] ss:$16 sps:$4 sm:$0xff]   ;;  %v2719_v49 = vld [vmem:[%s4065_s1 + $0x180] ss:$16 sps:$4 sm:$0xff]  }
  0x18   :  { %1664 = vmatpush1.bf16.msra.mxu1 %v2684_v23  ;;  %1624 = vmatprep.subr.bf16.mxu0 %v2685_v24  ;;  %v2717_v45 = vld [vmem:[%s4065_s1 + $0x384] ss:$16 sps:$4 sm:$0xff]   ;;  %v2720_v50 = vld [vmem:[%s4065_s1 + $0x380] ss:$16 sps:$4 sm:$0xff]  }
  0x19   :  { %1665 = vmatprep.subr.bf16.mxu1 %v2687_v25  ;;  %v22_v46 = vld [vmem:[%s4064_s0] sm:$0xff] }
  0x1a   :  { %v3267_v47 = vcombine.high %v22_v46, %v22_v46  ;;  %v2721_v52 = vld [vmem:[%s4065_s1 + $0x164] ss:$16 sps:$4 sm:$0xff]   ;;  %v2725_v54 = vld [vmem:[%s4065_s1 + $0x160] ss:$16 sps:$4 sm:$0xff]   ;;  %v3336_v6 = vcombine.low %v22_v46, %v22_v46 }
  0x1b   :  { %1625 = vmatpush1.bf16.msra.mxu0 %v2689_v26  ;;  %v2723_v53 = vld [vmem:[%s4065_s1 + $0x364] ss:$16 sps:$4 sm:$0xff]   ;;  %v2726_v55 = vld [vmem:[%s4065_s1 + $0x360] ss:$16 sps:$4 sm:$0xff]  }
  0x1c   :  { %1666 = vmatpush1.bf16.msra.mxu1 %v2690_v27  ;;  %1626 = vmatprep.subr.bf16.mxu0 %v2691_v28  ;;  %v2727_v56 = vld [vmem:[%s4065_s1 + $0x144] ss:$16 sps:$4 sm:$0xff]   ;;  %v2731_v58 = vld [vmem:[%s4065_s1 + $0x140] ss:$16 sps:$4 sm:$0xff]  }
  0x1d   :  { %1667 = vmatprep.subr.bf16.mxu1 %v2693_v29  ;;  %1644 = vmatprep.mubr.bf16.mxu0 %v3267_v47  ;;  %v2729_v57 = vld [vmem:[%s4065_s1 + $0x344] ss:$16 sps:$4 sm:$0xff]   ;;  %v2732_v59 = vld [vmem:[%s4065_s1 + $0x340] ss:$16 sps:$4 sm:$0xff]  }
  0x1e   :  { %v2733_v60 = vld [vmem:[%s4065_s1 + $0x124] ss:$16 sps:$4 sm:$0xff]   ;;  %v2737_v62 = vld [vmem:[%s4065_s1 + $0x120] ss:$16 sps:$4 sm:$0xff]  }
  0x1f   :  { %1627 = vmatpush1.bf16.msra.mxu0 %v2695_v30  ;;  %v2735_v61 = vld [vmem:[%s4065_s1 + $0x324] ss:$16 sps:$4 sm:$0xff]   ;;  %v2738_v63 = vld [vmem:[%s4065_s1 + $0x320] ss:$16 sps:$4 sm:$0xff]  }
  0x20   :  { %1668 = vmatpush1.bf16.msra.mxu1 %v2696_v31  ;;  %1628 = vmatprep.subr.bf16.mxu0 %v2697_v32  ;;  %v2739_v0 = vld [vmem:[%s4065_s1 + $0x104] ss:$16 sps:$4 sm:$0xff]   ;;  %v2743_v2 = vld [vmem:[%s4065_s1 + $0x100] ss:$16 sps:$4 sm:$0xff]  }
  0x21   :  { %1669 = vmatprep.subr.bf16.mxu1 %v2699_v33  ;;  %v2741_v1 = vld [vmem:[%s4065_s1 + $0x304] ss:$16 sps:$4 sm:$0xff]   ;;  %v2744_v3 = vld [vmem:[%s4065_s1 + $0x300] ss:$16 sps:$4 sm:$0xff]   ;;  %v3422_v33 = vld [vmem:[%s4064_s0 + $0x18] sm:$0xff] }
  0x22   :  { %v2751_v4 = vld [vmem:[%s4065_s1 + $0x4e4] ss:$16 sps:$4 sm:$0xff]   ;;  %v2749_v8 = vld [vmem:[%s4065_s1 + $0x4e0] ss:$16 sps:$4 sm:$0xff]  }
  0x23   :  { %1629 = vmatpush2.bf16.msra.mxu0 %v2701_v34  ;;  %v2754_v5 = vld [vmem:[%s4065_s1 + $0x6e4] ss:$16 sps:$4 sm:$0xff]   ;;  %v2752_v9 = vld [vmem:[%s4065_s1 + $0x6e0] ss:$16 sps:$4 sm:$0xff]  }
  0x24   :  { %1670 = vmatpush2.bf16.msra.mxu1 %v2702_v35  ;;  %1630 = vmatprep.subr.bf16.mxu0 %v2703_v36  ;;  %v2757_v10 = vld [vmem:[%s4065_s1 + $0x4c4] ss:$16 sps:$4 sm:$0xff]   ;;  %v2755_v12 = vld [vmem:[%s4065_s1 + $0x4c0] ss:$16 sps:$4 sm:$0xff]  }
  0x25   :  { %1671 = vmatprep.subr.bf16.mxu1 %v2705_v37  ;;  %v2760_v11 = vld [vmem:[%s4065_s1 + $0x6c4] ss:$16 sps:$4 sm:$0xff]   ;;  %v2758_v13 = vld [vmem:[%s4065_s1 + $0x6c0] ss:$16 sps:$4 sm:$0xff]   ;;  %v3436_v37 = vcombine.high %v3422_v33, %v3422_v33 }
  0x26   :  { %v2763_v14 = vld [vmem:[%s4065_s1 + $0x4a4] ss:$16 sps:$4 sm:$0xff]   ;;  %v2761_v16 = vld [vmem:[%s4065_s1 + $0x4a0] ss:$16 sps:$4 sm:$0xff]  }
  0x27   :  { %1631 = vmatpush2.bf16.msra.mxu0 %v2707_v38  ;;  %v2766_v15 = vld [vmem:[%s4065_s1 + $0x6a4] ss:$16 sps:$4 sm:$0xff]   ;;  %v2764_v17 = vld [vmem:[%s4065_s1 + $0x6a0] ss:$16 sps:$4 sm:$0xff]  }
  0x28   :  { %1672 = vmatpush2.bf16.msra.mxu1 %v2708_v39  ;;  %1632 = vmatprep.subr.bf16.mxu0 %v2709_v40  ;;  %v2769_v18 = vld [vmem:[%s4065_s1 + $0x484] ss:$16 sps:$4 sm:$0xff]   ;;  %v2767_v20 = vld [vmem:[%s4065_s1 + $0x480] ss:$16 sps:$4 sm:$0xff]  }
  0x29   :  { %1673 = vmatprep.subr.bf16.mxu1 %v2711_v41  ;;  %v2772_v19 = vld [vmem:[%s4065_s1 + $0x684] ss:$16 sps:$4 sm:$0xff]   ;;  %v2770_v21 = vld [vmem:[%s4065_s1 + $0x680] ss:$16 sps:$4 sm:$0xff]  }
  0x2a   :  { %v2775_v22 = vld [vmem:[%s4065_s1 + $0x464] ss:$16 sps:$4 sm:$0xff]   ;;  %v2773_v24 = vld [vmem:[%s4065_s1 + $0x460] ss:$16 sps:$4 sm:$0xff]  }
  0x2b   :  { %1633 = vmatpush2.bf16.msra.mxu0 %v2713_v42  ;;  %v2778_v23 = vld [vmem:[%s4065_s1 + $0x664] ss:$16 sps:$4 sm:$0xff]   ;;  %v2776_v25 = vld [vmem:[%s4065_s1 + $0x660] ss:$16 sps:$4 sm:$0xff]  }
  0x2c   :  { %1674 = vmatpush2.bf16.msra.mxu1 %v2714_v43  ;;  %1634 = vmatprep.subr.bf16.mxu0 %v2715_v44  ;;  %v2781_v26 = vld [vmem:[%s4065_s1 + $0x444] ss:$16 sps:$4 sm:$0xff]   ;;  %v2779_v28 = vld [vmem:[%s4065_s1 + $0x440] ss:$16 sps:$4 sm:$0xff]  }
  0x2d   :  { %1675 = vmatprep.subr.bf16.mxu1 %v2717_v45  ;;  %v2784_v27 = vld [vmem:[%s4065_s1 + $0x644] ss:$16 sps:$4 sm:$0xff]   ;;  %v2782_v29 = vld [vmem:[%s4065_s1 + $0x640] ss:$16 sps:$4 sm:$0xff]  }
  0x2e   :  { %v2787_v30 = vld [vmem:[%s4065_s1 + $0x424] ss:$16 sps:$4 sm:$0xff]   ;;  %v2785_v34 = vld [vmem:[%s4065_s1 + $0x420] ss:$16 sps:$4 sm:$0xff]  }
  0x2f   :  { %1635 = vmatpush2.bf16.msra.mxu0 %v2719_v49  ;;  %v2790_v31 = vld [vmem:[%s4065_s1 + $0x624] ss:$16 sps:$4 sm:$0xff]   ;;  %v2788_v35 = vld [vmem:[%s4065_s1 + $0x620] ss:$16 sps:$4 sm:$0xff]  }
  0x30   :  { %1676 = vmatpush2.bf16.msra.mxu1 %v2720_v50  ;;  %1636 = vmatprep.subr.bf16.mxu0 %v2721_v52  ;;  %v3417_v32 = vld [vmem:[%s4064_s0 + $0x10] sm:$0xff] }
  0x31   :  { %1677 = vmatprep.subr.bf16.mxu1 %v2723_v53  ;;  %v3432_v36 = vcombine.high %v3417_v32, %v3417_v32  ;;  %v2793_v38 = vld [vmem:[%s4065_s1 + $0x404] ss:$16 sps:$4 sm:$0xff]   ;;  %v2791_v40 = vld [vmem:[%s4065_s1 + $0x400] ss:$16 sps:$4 sm:$0xff]  }
  0x32   :  { %v2796_v39 = vld [vmem:[%s4065_s1 + $0x604] ss:$16 sps:$4 sm:$0xff]   ;;  %v2794_v41 = vld [vmem:[%s4065_s1 + $0x600] ss:$16 sps:$4 sm:$0xff]  }
  0x33   :  { %1637 = vmatpush2.bf16.msra.mxu0 %v2725_v54  ;;  %v2799_v42 = vld [vmem:[%s4065_s1 + $0x5e4] ss:$16 sps:$4 sm:$0xff]   ;;  %v2797_v44 = vld [vmem:[%s4065_s1 + $0x5e0] ss:$16 sps:$4 sm:$0xff]  }
  0x34   :  { %1678 = vmatpush2.bf16.msra.mxu1 %v2726_v55  ;;  %1638 = vmatprep.subr.bf16.mxu0 %v2727_v56  ;;  %v2802_v43 = vld [vmem:[%s4065_s1 + $0x7e4] ss:$16 sps:$4 sm:$0xff]   ;;  %v2800_v45 = vld [vmem:[%s4065_s1 + $0x7e0] ss:$16 sps:$4 sm:$0xff]  }
  0x35   :  { %1679 = vmatprep.subr.bf16.mxu1 %v2729_v57  ;;  %v2805_v46 = vld [vmem:[%s4065_s1 + $0x5c4] ss:$16 sps:$4 sm:$0xff]   ;;  %v2803_v49 = vld [vmem:[%s4065_s1 + $0x5c0] ss:$16 sps:$4 sm:$0xff]  }
  0x36   :  { %v2808_v48 = vld [vmem:[%s4065_s1 + $0x7c4] ss:$16 sps:$4 sm:$0xff]   ;;  %v2806_v50 = vld [vmem:[%s4065_s1 + $0x7c0] ss:$16 sps:$4 sm:$0xff]  }
  0x37   :  { %1639 = vmatpush2.bf16.msra.mxu0 %v2731_v58  ;;  %v2811_v52 = vld [vmem:[%s4065_s1 + $0x5a4] ss:$16 sps:$4 sm:$0xff]   ;;  %v2809_v54 = vld [vmem:[%s4065_s1 + $0x5a0] ss:$16 sps:$4 sm:$0xff]  }
  0x38   :  { %1680 = vmatpush2.bf16.msra.mxu1 %v2732_v59  ;;  %1640 = vmatprep.subr.bf16.mxu0 %v2733_v60  ;;  %v2814_v53 = vld [vmem:[%s4065_s1 + $0x7a4] ss:$16 sps:$4 sm:$0xff]   ;;  %v2812_v55 = vld [vmem:[%s4065_s1 + $0x7a0] ss:$16 sps:$4 sm:$0xff]  }
  0x39   :  { %1681 = vmatprep.subr.bf16.mxu1 %v2735_v61  ;;  %v2817_v56 = vld [vmem:[%s4065_s1 + $0x584] ss:$16 sps:$4 sm:$0xff]   ;;  %v2815_v58 = vld [vmem:[%s4065_s1 + $0x580] ss:$16 sps:$4 sm:$0xff]  }
  0x3a   :  { %v2820_v57 = vld [vmem:[%s4065_s1 + $0x784] ss:$16 sps:$4 sm:$0xff]   ;;  %v2818_v59 = vld [vmem:[%s4065_s1 + $0x780] ss:$16 sps:$4 sm:$0xff]  }
  0x3b   :  { %1641 = vmatpush2.bf16.msra.mxu0 %v2737_v62  ;;  %v2823_v60 = vld [vmem:[%s4065_s1 + $0x564] ss:$16 sps:$4 sm:$0xff]   ;;  %v2821_v62 = vld [vmem:[%s4065_s1 + $0x560] ss:$16 sps:$4 sm:$0xff]  }
  0x3c   :  { %1682 = vmatpush2.bf16.msra.mxu1 %v2738_v63  ;;  %1642 = vmatprep.subr.bf16.mxu0 %v2739_v0  ;;  %v2826_v61 = vld [vmem:[%s4065_s1 + $0x764] ss:$16 sps:$4 sm:$0xff]   ;;  %v2824_v63 = vld [vmem:[%s4065_s1 + $0x760] ss:$16 sps:$4 sm:$0xff]  }
  0x3d   :  { %1683 = vmatprep.subr.bf16.mxu1 %v2741_v1  ;;  %v2829_v0 = vld [vmem:[%s4065_s1 + $0x544] ss:$16 sps:$4 sm:$0xff]  }
  0x3e   :  { %v2832_v1 = vld [vmem:[%s4065_s1 + $0x744] ss:$16 sps:$4 sm:$0xff]  }
  0x3f   :  { %1643 = vmatpush2.bf16.msra.mxu0 %v2743_v2  ;;  %v2827_v2 = vld [vmem:[%s4065_s1 + $0x540] ss:$16 sps:$4 sm:$0xff]  }
  0x40   :  { %1684 = vmatpush2.bf16.msra.mxu1 %v2744_v3  ;;  %1694 = vmatprep.subr.bf16.mxu0 %v2751_v4  ;;  %v2830_v3 = vld [vmem:[%s4065_s1 + $0x740] ss:$16 sps:$4 sm:$0xff]   ;;  %v2835_v4 = vld [vmem:[%s4065_s1 + $0x524] ss:$16 sps:$4 sm:$0xff]  }
  0x41   :  { %1735 = vmatprep.subr.bf16.mxu1 %v2754_v5  ;;  %v2838_v5 = vld [vmem:[%s4065_s1 + $0x724] ss:$16 sps:$4 sm:$0xff]  }
  0x42   :  { %1645 = vmatmul.mubr.bf16.vlgmr.msra.gmra.mxu0 %v3336_v6 }
  0x43   :  { %1686 = vmatmul.mubr.bf16.vlgmr.msra.gmra.mxu1 %v3338_v7  ;;  %1695 = vmatpush1.bf16.msra.mxu0 %v2749_v8  ;;  %v2833_v8 = vld [vmem:[%s4065_s1 + $0x520] ss:$16 sps:$4 sm:$0xff]  }
  0x44   :  { %1736 = vmatpush1.bf16.msra.mxu1 %v2752_v9  ;;  %1696 = vmatprep.subr.bf16.mxu0 %v2757_v10  ;;  %v2836_v9 = vld [vmem:[%s4065_s1 + $0x720] ss:$16 sps:$4 sm:$0xff]   ;;  %v2841_v10 = vld [vmem:[%s4065_s1 + $0x504] ss:$16 sps:$4 sm:$0xff]  }
  0x45   :  { %1737 = vmatprep.subr.bf16.mxu1 %v2760_v11  ;;  %1726 = vmatprep.mubr.bf16.mxu0 %v3432_v36  ;;  %v2844_v11 = vld [vmem:[%s4065_s1 + $0x704] ss:$16 sps:$4 sm:$0xff]  }
  0x46   :  { %1767 = vmatprep.mubr.bf16.mxu1 %v3436_v37 }
  0x47   :  { %1697 = vmatpush1.bf16.msra.mxu0 %v2755_v12  ;;  %v2839_v12 = vld [vmem:[%s4065_s1 + $0x500] ss:$16 sps:$4 sm:$0xff]  }
  0x48   :  { %1738 = vmatpush1.bf16.msra.mxu1 %v2758_v13  ;;  %1698 = vmatprep.subr.bf16.mxu0 %v2763_v14  ;;  %v2842_v13 = vld [vmem:[%s4065_s1 + $0x700] ss:$16 sps:$4 sm:$0xff]   ;;  %v2851_v14 = vld [vmem:[%s4065_s1 + $0xec] ss:$16 sps:$4 sm:$0xff]  }
  0x49   :  { %1739 = vmatprep.subr.bf16.mxu1 %v2766_v15  ;;  %v2854_v15 = vld [vmem:[%s4065_s1 + $0x2ec] ss:$16 sps:$4 sm:$0xff]  }
  0x4b   :  { %1699 = vmatpush1.bf16.msra.mxu0 %v2761_v16  ;;  %v3556_v16 = vcombine.low %v3417_v32, %v3417_v32  ;;  %v2873_v32 = vld [vmem:[%s4065_s1 + $0x68] ss:$16 sps:$4 sm:$0xff]  }
  0x4c   :  { %1740 = vmatpush1.bf16.msra.mxu1 %v2764_v17  ;;  %1700 = vmatprep.subr.bf16.mxu0 %v2769_v18  ;;  %v3560_v17 = vcombine.low %v3422_v33, %v3422_v33  ;;  %v2849_v18 = vld [vmem:[%s4065_s1 + $0xe8] ss:$16 sps:$4 sm:$0xff]  }
  0x4d   :  { %1741 = vmatprep.subr.bf16.mxu1 %v2772_v19  ;;  %v2852_v19 = vld [vmem:[%s4065_s1 + $0x2e8] ss:$16 sps:$4 sm:$0xff]  }
  0x4e   :  { %v2876_v33 = vld [vmem:[%s4065_s1 + $0x268] ss:$16 sps:$4 sm:$0xff]  }
  0x4f   :  { %1701 = vmatpush1.bf16.msra.mxu0 %v2767_v20  ;;  %v2857_v20 = vld [vmem:[%s4065_s1 + $0xcc] ss:$16 sps:$4 sm:$0xff]  }
  0x50   :  { %1742 = vmatpush1.bf16.msra.mxu1 %v2770_v21  ;;  %1702 = vmatprep.subr.bf16.mxu0 %v2775_v22  ;;  %v2860_v21 = vld [vmem:[%s4065_s1 + $0x2cc] ss:$16 sps:$4 sm:$0xff]   ;;  %v2855_v22 = vld [vmem:[%s4065_s1 + $0xc8] ss:$16 sps:$4 sm:$0xff]  }
  0x51   :  { %1743 = vmatprep.subr.bf16.mxu1 %v2778_v23  ;;  %v2858_v23 = vld [vmem:[%s4065_s1 + $0x2c8] ss:$16 sps:$4 sm:$0xff]  }
  0x53   :  { %1703 = vmatpush1.bf16.msra.mxu0 %v2773_v24  ;;  %v2863_v24 = vld [vmem:[%s4065_s1 + $0xac] ss:$16 sps:$4 sm:$0xff]  }
  0x54   :  { %1744 = vmatpush1.bf16.msra.mxu1 %v2776_v25  ;;  %1704 = vmatprep.subr.bf16.mxu0 %v2781_v26  ;;  %v2866_v25 = vld [vmem:[%s4065_s1 + $0x2ac] ss:$16 sps:$4 sm:$0xff]   ;;  %v2861_v26 = vld [vmem:[%s4065_s1 + $0xa8] ss:$16 sps:$4 sm:$0xff]  }
  0x55   :  { %1745 = vmatprep.subr.bf16.mxu1 %v2784_v27  ;;  %v2864_v27 = vld [vmem:[%s4065_s1 + $0x2a8] ss:$16 sps:$4 sm:$0xff]  }
  0x57   :  { %1705 = vmatpush1.bf16.msra.mxu0 %v2779_v28  ;;  %v2869_v28 = vld [vmem:[%s4065_s1 + $0x8c] ss:$16 sps:$4 sm:$0xff]  }
  0x58   :  { %1746 = vmatpush1.bf16.msra.mxu1 %v2782_v29  ;;  %1706 = vmatprep.subr.bf16.mxu0 %v2787_v30  ;;  %v2870_v29 = vld [vmem:[%s4065_s1 + $0x288] ss:$16 sps:$4 sm:$0xff]   ;;  %v2875_v30 = vld [vmem:[%s4065_s1 + $0x6c] ss:$16 sps:$4 sm:$0xff]  }
  0x59   :  { %1747 = vmatprep.subr.bf16.mxu1 %v2790_v31  ;;  %v2878_v31 = vld [vmem:[%s4065_s1 + $0x26c] ss:$16 sps:$4 sm:$0xff]  }
  0x5b   :  { %1707 = vmatpush1.bf16.msra.mxu0 %v2785_v34  ;;  %v2881_v34 = vld [vmem:[%s4065_s1 + $0x4c] ss:$16 sps:$4 sm:$0xff]  }
  0x5c   :  { %1748 = vmatpush1.bf16.msra.mxu1 %v2788_v35  ;;  %1708 = vmatprep.subr.bf16.mxu0 %v2793_v38  ;;  %v2884_v35 = vld [vmem:[%s4065_s1 + $0x24c] ss:$16 sps:$4 sm:$0xff]   ;;  %v2879_v38 = vld [vmem:[%s4065_s1 + $0x48] ss:$16 sps:$4 sm:$0xff]  }
  0x5d   :  { %1749 = vmatprep.subr.bf16.mxu1 %v2796_v39  ;;  %v2882_v39 = vld [vmem:[%s4065_s1 + $0x248] ss:$16 sps:$4 sm:$0xff]  }
  0x5f   :  { %1709 = vmatpush1.bf16.msra.mxu0 %v2791_v40  ;;  %v2887_v40 = vld [vmem:[%s4065_s1 + $0x2c] ss:$16 sps:$4 sm:$0xff]  }
  0x60   :  { %1750 = vmatpush1.bf16.msra.mxu1 %v2794_v41  ;;  %1710 = vmatprep.subr.bf16.mxu0 %v2799_v42  ;;  %v2890_v41 = vld [vmem:[%s4065_s1 + $0x22c] ss:$16 sps:$4 sm:$0xff]   ;;  %v2885_v42 = vld [vmem:[%s4065_s1 + $0x28] ss:$16 sps:$4 sm:$0xff]  }
  0x61   :  { %1751 = vmatprep.subr.bf16.mxu1 %v2802_v43  ;;  %v2888_v43 = vld [vmem:[%s4065_s1 + $0x228] ss:$16 sps:$4 sm:$0xff]  }
  0x63   :  { %1711 = vmatpush2.bf16.msra.mxu0 %v2797_v44  ;;  %v2893_v44 = vld [vmem:[%s4065_s1 + $0xc] ss:$16 sps:$4 sm:$0xff]  }
  0x64   :  { %1752 = vmatpush2.bf16.msra.mxu1 %v2800_v45  ;;  %1712 = vmatprep.subr.bf16.mxu0 %v2805_v46  ;;  %v2896_v45 = vld [vmem:[%s4065_s1 + $0x20c] ss:$16 sps:$4 sm:$0xff]   ;;  %v2891_v46 = vld [vmem:[%s4065_s1 + $0x8] ss:$16 sps:$4 sm:$0xff]  }
  0x65   :  { %1753 = vmatprep.subr.bf16.mxu1 %v2808_v48  ;;  %v2894_v48 = vld [vmem:[%s4065_s1 + $0x208] ss:$16 sps:$4 sm:$0xff]  }
  0x67   :  { %1713 = vmatpush2.bf16.msra.mxu0 %v2803_v49  ;;  %v2899_v49 = vld [vmem:[%s4065_s1 + $0x1ec] ss:$16 sps:$4 sm:$0xff]  }
  0x68   :  { %1754 = vmatpush2.bf16.msra.mxu1 %v2806_v50  ;;  %1714 = vmatprep.subr.bf16.mxu0 %v2811_v52  ;;  %v2902_v50 = vld [vmem:[%s4065_s1 + $0x3ec] ss:$16 sps:$4 sm:$0xff]   ;;  %v2897_v52 = vld [vmem:[%s4065_s1 + $0x1e8] ss:$16 sps:$4 sm:$0xff]  }
  0x69   :  { %1755 = vmatprep.subr.bf16.mxu1 %v2814_v53  ;;  %v2900_v53 = vld [vmem:[%s4065_s1 + $0x3e8] ss:$16 sps:$4 sm:$0xff]  }
  0x6b   :  { %1715 = vmatpush2.bf16.msra.mxu0 %v2809_v54  ;;  %v2905_v54 = vld [vmem:[%s4065_s1 + $0x1cc] ss:$16 sps:$4 sm:$0xff]  }
  0x6c   :  { %1756 = vmatpush2.bf16.msra.mxu1 %v2812_v55  ;;  %1716 = vmatprep.subr.bf16.mxu0 %v2817_v56  ;;  %v2908_v55 = vld [vmem:[%s4065_s1 + $0x3cc] ss:$16 sps:$4 sm:$0xff]   ;;  %v2903_v56 = vld [vmem:[%s4065_s1 + $0x1c8] ss:$16 sps:$4 sm:$0xff]  }
  0x6d   :  { %1757 = vmatprep.subr.bf16.mxu1 %v2820_v57  ;;  %v2906_v57 = vld [vmem:[%s4065_s1 + $0x3c8] ss:$16 sps:$4 sm:$0xff]  }
  0x6f   :  { %1717 = vmatpush2.bf16.msra.mxu0 %v2815_v58  ;;  %v2911_v58 = vld [vmem:[%s4065_s1 + $0x1ac] ss:$16 sps:$4 sm:$0xff]  }
  0x70   :  { %1758 = vmatpush2.bf16.msra.mxu1 %v2818_v59  ;;  %1718 = vmatprep.subr.bf16.mxu0 %v2823_v60  ;;  %v2914_v59 = vld [vmem:[%s4065_s1 + $0x3ac] ss:$16 sps:$4 sm:$0xff]   ;;  %v2909_v60 = vld [vmem:[%s4065_s1 + $0x1a8] ss:$16 sps:$4 sm:$0xff]  }
  0x71   :  { %1759 = vmatprep.subr.bf16.mxu1 %v2826_v61  ;;  %v2912_v61 = vld [vmem:[%s4065_s1 + $0x3a8] ss:$16 sps:$4 sm:$0xff]  }
  0x73   :  { %1719 = vmatpush2.bf16.msra.mxu0 %v2821_v62  ;;  %v2917_v62 = vld [vmem:[%s4065_s1 + $0x18c] ss:$16 sps:$4 sm:$0xff]  }
  0x74   :  { %1760 = vmatpush2.bf16.msra.mxu1 %v2824_v63  ;;  %1720 = vmatprep.subr.bf16.mxu0 %v2829_v0  ;;  %v2920_v63 = vld [vmem:[%s4065_s1 + $0x38c] ss:$16 sps:$4 sm:$0xff]   ;;  %v2915_v0 = vld [vmem:[%s4065_s1 + $0x188] ss:$16 sps:$4 sm:$0xff]  }
  0x75   :  { %1761 = vmatprep.subr.bf16.mxu1 %v2832_v1  ;;  %v2918_v1 = vld [vmem:[%s4065_s1 + $0x388] ss:$16 sps:$4 sm:$0xff]  }
  0x77   :  { %1721 = vmatpush2.bf16.msra.mxu0 %v2827_v2  ;;  %v2923_v2 = vld [vmem:[%s4065_s1 + $0x16c] ss:$16 sps:$4 sm:$0xff]  }
  0x78   :  { %1762 = vmatpush2.bf16.msra.mxu1 %v2830_v3  ;;  %1722 = vmatprep.subr.bf16.mxu0 %v2835_v4  ;;  %v2926_v3 = vld [vmem:[%s4065_s1 + $0x36c] ss:$16 sps:$4 sm:$0xff]   ;;  %v2921_v4 = vld [vmem:[%s4065_s1 + $0x168] ss:$16 sps:$4 sm:$0xff]  }
  0x79   :  { %1763 = vmatprep.subr.bf16.mxu1 %v2838_v5  ;;  %v2924_v5 = vld [vmem:[%s4065_s1 + $0x368] ss:$16 sps:$4 sm:$0xff]  }
  0x7b   :  { %1723 = vmatpush2.bf16.msra.mxu0 %v2833_v8  ;;  %v2929_v8 = vld [vmem:[%s4065_s1 + $0x14c] ss:$16 sps:$4 sm:$0xff]  }
  0x7c   :  { %1764 = vmatpush2.bf16.msra.mxu1 %v2836_v9  ;;  %1724 = vmatprep.subr.bf16.mxu0 %v2841_v10  ;;  %v2932_v9 = vld [vmem:[%s4065_s1 + $0x34c] ss:$16 sps:$4 sm:$0xff]   ;;  %v2927_v10 = vld [vmem:[%s4065_s1 + $0x148] ss:$16 sps:$4 sm:$0xff]  }
  0x7d   :  { %1765 = vmatprep.subr.bf16.mxu1 %v2844_v11  ;;  %v2930_v11 = vld [vmem:[%s4065_s1 + $0x348] ss:$16 sps:$4 sm:$0xff]  }
  0x7f   :  { %1725 = vmatpush2.bf16.msra.mxu0 %v2839_v12  ;;  %v2935_v12 = vld [vmem:[%s4065_s1 + $0x12c] ss:$16 sps:$4 sm:$0xff]  }
  0x80   :  { %1766 = vmatpush2.bf16.msra.mxu1 %v2842_v13  ;;  %1776 = vmatprep.subr.bf16.mxu0 %v2851_v14  ;;  %v2938_v13 = vld [vmem:[%s4065_s1 + $0x32c] ss:$16 sps:$4 sm:$0xff]   ;;  %v2933_v14 = vld [vmem:[%s4065_s1 + $0x128] ss:$16 sps:$4 sm:$0xff]  }
  0x81   :  { %1817 = vmatprep.subr.bf16.mxu1 %v2854_v15  ;;  %v2936_v15 = vld [vmem:[%s4065_s1 + $0x328] ss:$16 sps:$4 sm:$0xff]  }
  0x82   :  { %1727 = vmatmul.mubr.bf16.vlgmr.msra.gmra.mxu0 %v3556_v16 }
  0x83   :  { %1768 = vmatmul.mubr.bf16.vlgmr.msra.gmra.mxu1 %v3560_v17  ;;  %1777 = vmatpush1.bf16.msra.mxu0 %v2849_v18  ;;  %v2941_v18 = vld [vmem:[%s4065_s1 + $0x10c] ss:$16 sps:$4 sm:$0xff]  }
  0x84   :  { %1818 = vmatpush1.bf16.msra.mxu1 %v2852_v19  ;;  %1778 = vmatprep.subr.bf16.mxu0 %v2857_v20  ;;  %v2944_v19 = vld [vmem:[%s4065_s1 + $0x30c] ss:$16 sps:$4 sm:$0xff]   ;;  %v2939_v20 = vld [vmem:[%s4065_s1 + $0x108] ss:$16 sps:$4 sm:$0xff]  }
  0x85   :  { %1819 = vmatprep.subr.bf16.mxu1 %v2860_v21  ;;  %1808 = vmatprep.mubr.bf16.mxu0 %v3267_v47  ;;  %v2872_v47 = vld [vmem:[%s4065_s1 + $0x28c] ss:$16 sps:$4 sm:$0xff]   ;;  %v2942_v21 = vld [vmem:[%s4065_s1 + $0x308] ss:$16 sps:$4 sm:$0xff]  }
  0x86   :  { %1849 = vmatprep.mubr.bf16.mxu1 %v3278_v51  ;;  %v2867_v51 = vld [vmem:[%s4065_s1 + $0x88] ss:$16 sps:$4 sm:$0xff]  }
  0x87   :  { %1779 = vmatpush1.bf16.msra.mxu0 %v2855_v22  ;;  %v2947_v22 = vld [vmem:[%s4065_s1 + $0x4ec] ss:$16 sps:$4 sm:$0xff]  }
  0x88   :  { %1820 = vmatpush1.bf16.msra.mxu1 %v2858_v23  ;;  %1780 = vmatprep.subr.bf16.mxu0 %v2863_v24  ;;  %v2950_v23 = vld [vmem:[%s4065_s1 + $0x6ec] ss:$16 sps:$4 sm:$0xff]   ;;  %v2945_v24 = vld [vmem:[%s4065_s1 + $0x4e8] ss:$16 sps:$4 sm:$0xff]  }
  0x89   :  { %1821 = vmatprep.subr.bf16.mxu1 %v2866_v25  ;;  %v2948_v25 = vld [vmem:[%s4065_s1 + $0x6e8] ss:$16 sps:$4 sm:$0xff]  }
  0x8b   :  { %1781 = vmatpush1.bf16.msra.mxu0 %v2861_v26  ;;  %v2953_v26 = vld [vmem:[%s4065_s1 + $0x4cc] ss:$16 sps:$4 sm:$0xff]  }
  0x8c   :  { %1822 = vmatpush1.bf16.msra.mxu1 %v2864_v27  ;;  %1782 = vmatprep.subr.bf16.mxu0 %v2869_v28  ;;  %v2956_v27 = vld [vmem:[%s4065_s1 + $0x6cc] ss:$16 sps:$4 sm:$0xff]   ;;  %v2951_v28 = vld [vmem:[%s4065_s1 + $0x4c8] ss:$16 sps:$4 sm:$0xff]  }
  0x8d   :  { %1823 = vmatprep.subr.bf16.mxu1 %v2872_v47  ;;  %v2954_v47 = vld [vmem:[%s4065_s1 + $0x6c8] ss:$16 sps:$4 sm:$0xff]  }
  0x8f   :  { %1783 = vmatpush1.bf16.msra.mxu0 %v2867_v51  ;;  %v2959_v51 = vld [vmem:[%s4065_s1 + $0x4ac] ss:$16 sps:$4 sm:$0xff]  }
  0x90   :  { %1824 = vmatpush1.bf16.msra.mxu1 %v2870_v29  ;;  %1784 = vmatprep.subr.bf16.mxu0 %v2875_v30  ;;  %v2962_v29 = vld [vmem:[%s4065_s1 + $0x6ac] ss:$16 sps:$4 sm:$0xff]  }
  0x91   :  { %1825 = vmatprep.subr.bf16.mxu1 %v2878_v31 }
  0x93   :  { %1785 = vmatpush1.bf16.msra.mxu0 %v2873_v32 }
  0x94   :  { %1826 = vmatpush1.bf16.msra.mxu1 %v2876_v33  ;;  %1786 = vmatprep.subr.bf16.mxu0 %v2881_v34 }
  0x95   :  { %1827 = vmatprep.subr.bf16.mxu1 %v2884_v35 }
  0x97   :  { %1787 = vmatpush1.bf16.msra.mxu0 %v2879_v38 }
  0x98   :  { %1828 = vmatpush1.bf16.msra.mxu1 %v2882_v39  ;;  %1788 = vmatprep.subr.bf16.mxu0 %v2887_v40 }
  0x99   :  { %1829 = vmatprep.subr.bf16.mxu1 %v2890_v41 }
  0x9b   :  { %1789 = vmatpush1.bf16.msra.mxu0 %v2885_v42 }
  0x9c   :  { %1830 = vmatpush1.bf16.msra.mxu1 %v2888_v43  ;;  %1790 = vmatprep.subr.bf16.mxu0 %v2893_v44 }
  0x9d   :  { %1831 = vmatprep.subr.bf16.mxu1 %v2896_v45 }
  0x9f   :  { %1791 = vmatpush1.bf16.msra.mxu0 %v2891_v46 }
  0xa0   :  { %1832 = vmatpush1.bf16.msra.mxu1 %v2894_v48  ;;  %1792 = vmatprep.subr.bf16.mxu0 %v2899_v49 }
  0xa1   :  { %1833 = vmatprep.subr.bf16.mxu1 %v2902_v50 }
  0xa3   :  { %1793 = vmatpush2.bf16.msra.mxu0 %v2897_v52 }
  0xa4   :  { %1834 = vmatpush2.bf16.msra.mxu1 %v2900_v53  ;;  %1794 = vmatprep.subr.bf16.mxu0 %v2905_v54 }
  0xa5   :  { %1835 = vmatprep.subr.bf16.mxu1 %v2908_v55 }
  0xa7   :  { %1795 = vmatpush2.bf16.msra.mxu0 %v2903_v56 }
  0xa8   :  { %1836 = vmatpush2.bf16.msra.mxu1 %v2906_v57  ;;  %1796 = vmatprep.subr.bf16.mxu0 %v2911_v58 }
  0xa9   :  { %1837 = vmatprep.subr.bf16.mxu1 %v2914_v59 }
  0xab   :  { %1797 = vmatpush2.bf16.msra.mxu0 %v2909_v60 }
  0xac   :  { %1838 = vmatpush2.bf16.msra.mxu1 %v2912_v61  ;;  %1798 = vmatprep.subr.bf16.mxu0 %v2917_v62 }
  0xad   :  { %1839 = vmatprep.subr.bf16.mxu1 %v2920_v63 }
  0xaf   :  { %1799 = vmatpush2.bf16.msra.mxu0 %v2915_v0 }
  0xb0   :  { %1840 = vmatpush2.bf16.msra.mxu1 %v2918_v1  ;;  %1800 = vmatprep.subr.bf16.mxu0 %v2923_v2 }
  0xb1   :  { %1841 = vmatprep.subr.bf16.mxu1 %v2926_v3 }
  0xb3   :  { %1801 = vmatpush2.bf16.msra.mxu0 %v2921_v4 }
  0xb4   :  { %1842 = vmatpush2.bf16.msra.mxu1 %v2924_v5  ;;  %1802 = vmatprep.subr.bf16.mxu0 %v2929_v8 }
  0xb5   :  { %1843 = vmatprep.subr.bf16.mxu1 %v2932_v9 }
  0xb7   :  { %1803 = vmatpush2.bf16.msra.mxu0 %v2927_v10 }
  0xb8   :  { %1844 = vmatpush2.bf16.msra.mxu1 %v2930_v11  ;;  %1804 = vmatprep.subr.bf16.mxu0 %v2935_v12 }
  0xb9   :  { %1845 = vmatprep.subr.bf16.mxu1 %v2938_v13 }
  0xbb   :  { %1805 = vmatpush2.bf16.msra.mxu0 %v2933_v14 }
  0xbc   :  { %1846 = vmatpush2.bf16.msra.mxu1 %v2936_v15  ;;  %1806 = vmatprep.subr.bf16.mxu0 %v2941_v18 }
  0xbd   :  { %1847 = vmatprep.subr.bf16.mxu1 %v2944_v19 }
  0xbf   :  { %1807 = vmatpush2.bf16.msra.mxu0 %v2939_v20 }
  0xc0   :  { %1848 = vmatpush2.bf16.msra.mxu1 %v2942_v21  ;;  %1858 = vmatprep.subr.bf16.mxu0 %v2947_v22 }
  0xc1   :  { %1899 = vmatprep.subr.bf16.mxu1 %v2950_v23 }
  0xc2   :  { %1809 = vmatmul.mubr.bf16.vlgmr.msra.gmra.mxu0 %v3336_v6 }
  0xc3   :  { %1850 = vmatmul.mubr.bf16.vlgmr.msra.gmra.mxu1 %v3338_v7  ;;  %1859 = vmatpush1.bf16.msra.mxu0 %v2945_v24 }
  0xc4   :  { %1900 = vmatpush1.bf16.msra.mxu1 %v2948_v25  ;;  %1860 = vmatprep.subr.bf16.mxu0 %v2953_v26 }
  0xc5   :  { %1901 = vmatprep.subr.bf16.mxu1 %v2956_v27  ;;  %1890 = vmatprep.mubr.bf16.mxu0 %v3432_v36 }
  0xc6   :  { %1931 = vmatprep.mubr.bf16.mxu1 %v3436_v37 }
  0xc7   :  { %10 = vsyncpa [#allocation3], 0  ;;  %1861 = vmatpush1.bf16.msra.mxu0 %v2951_v28  ;;  %v2957_v6 = vld [vmem:[%s4065_s1 + $0x4a8] ss:$16 sps:$4 sm:$0xff]   ;;  %v2965_v30 = vld [vmem:[%s4065_s1 + $0x48c] ss:$16 sps:$4 sm:$0xff]  }
  0xc8   :  { %1902 = vmatpush1.bf16.msra.mxu1 %v2954_v47  ;;  %v2960_v7 = vld [vmem:[%s4065_s1 + $0x6a8] ss:$16 sps:$4 sm:$0xff]   ;;  %1862 = vmatprep.subr.bf16.mxu0 %v2959_v51  ;;  %v2968_v36 = vld [vmem:[%s4065_s1 + $0x68c] ss:$16 sps:$4 sm:$0xff]   ;;  %v3043_v26 = vld [vmem:[%s4067_s3 + $0x70] sm:$0xff]   ;;  %s3095_s10 = smov [#allocation2]  }
  0xc9   :  { %1903 = vmatprep.subr.bf16.mxu1 %v2962_v29  ;;  %v2963_v37 = vld [vmem:[%s4065_s1 + $0x488] ss:$16 sps:$4 sm:$0xff]   ;;  %v2971_v32 = vld [vmem:[%s4065_s1 + $0x46c] ss:$16 sps:$4 sm:$0xff]   ;;  %v3044_v47 = vld [vmem:[%s4067_s3 + $0x30] sm:$0xff]   ;;  %s2299_s11 = sshll.u32 %s3095_s10, 4  ;;  %s2300_s11 = int_to_ptr.vmem [resolvable:$true] %s2299_s11 }
  0xca   :  { %v2966_v31 = vld [vmem:[%s4065_s1 + $0x688] ss:$16 sps:$4 sm:$0xff]   ;;  %v2974_v33 = vld [vmem:[%s4065_s1 + $0x66c] ss:$16 sps:$4 sm:$0xff]   ;;  %vm2291_vm0 = vcmask 80896   ;;  %s3073_s12 = scalar_lea.vmem %s2300_s11, 128  ;;  %p3078_p1 = scmp.lt.s32.totalorder %s2300_s11, %s2300_s11 }
  0xcb   :  { %1863 = vmatpush1.bf16.msra.mxu0 %v2957_v6  ;;  %v2969_v34 = vld [vmem:[%s4065_s1 + $0x468] ss:$16 sps:$4 sm:$0xff]   ;;  %v2977_v38 = vld [vmem:[%s4065_s1 + $0x44c] ss:$16 sps:$4 sm:$0xff]   ;;  %p3074_p0 = scmp.ne.s32.totalorder %s2300_s11, %s3073_s12  ;;  %p3079_p2 = scmp.lt.s32.totalorder %s3073_s12, %s3073_s12 }
  0xcc   :  { %1904 = vmatpush1.bf16.msra.mxu1 %v2960_v7  ;;  %1864 = vmatprep.subr.bf16.mxu0 %v2965_v30  ;;  %v2972_v35 = vld [vmem:[%s4065_s1 + $0x668] ss:$16 sps:$4 sm:$0xff]   ;;  %v2980_v39 = vld [vmem:[%s4065_s1 + $0x64c] ss:$16 sps:$4 sm:$0xff]  }
  0xcd   :  { %1905 = vmatprep.subr.bf16.mxu1 %v2968_v36  ;;  %v2975_v40 = vld [vmem:[%s4065_s1 + $0x448] ss:$16 sps:$4 sm:$0xff]   ;;  %v2983_v42 = vld [vmem:[%s4065_s1 + $0x42c] ss:$16 sps:$4 sm:$0xff]   ;;  %p3080_p3 = por %p3079_p2, %p3078_p1 }
  0xce   :  { %v2978_v41 = vld [vmem:[%s4065_s1 + $0x648] ss:$16 sps:$4 sm:$0xff]   ;;  %v2986_v43 = vld [vmem:[%s4065_s1 + $0x62c] ss:$16 sps:$4 sm:$0xff]  }
  0xcf   :  { %1865 = vmatpush1.bf16.msra.mxu0 %v2963_v37  ;;  %v2981_v44 = vld [vmem:[%s4065_s1 + $0x428] ss:$16 sps:$4 sm:$0xff]   ;;  %v2989_v46 = vld [vmem:[%s4065_s1 + $0x40c] ss:$16 sps:$4 sm:$0xff]   ;;  %p3081_p4 = pnand %p3080_p3, %p3074_p0 }
  0xd0   :  { %1906 = vmatpush1.bf16.msra.mxu1 %v2966_v31  ;;  %1866 = vmatprep.subr.bf16.mxu0 %v2971_v32  ;;  %v2984_v45 = vld [vmem:[%s4065_s1 + $0x628] ss:$16 sps:$4 sm:$0xff]   ;;  %v2992_v48 = vld [vmem:[%s4065_s1 + $0x60c] ss:$16 sps:$4 sm:$0xff]  }
  0xd1   :  { %1907 = vmatprep.subr.bf16.mxu1 %v2974_v33  ;;  %v2987_v49 = vld [vmem:[%s4065_s1 + $0x408] ss:$16 sps:$4 sm:$0xff]   ;;  %v2995_v52 = vld [vmem:[%s4065_s1 + $0x5ec] ss:$16 sps:$4 sm:$0xff]   ;;  %v3059_v33 = vld [vmem:[%s4067_s3 + $0xf0] sm:$0xff]  }
  0xd2   :  { %v2990_v50 = vld [vmem:[%s4065_s1 + $0x608] ss:$16 sps:$4 sm:$0xff]   ;;  %v2998_v53 = vld [vmem:[%s4065_s1 + $0x7ec] ss:$16 sps:$4 sm:$0xff]  }
  0xd3   :  { %1867 = vmatpush1.bf16.msra.mxu0 %v2969_v34  ;;  %v2993_v54 = vld [vmem:[%s4065_s1 + $0x5e8] ss:$16 sps:$4 sm:$0xff]   ;;  %v3001_v56 = vld [vmem:[%s4065_s1 + $0x5cc] ss:$16 sps:$4 sm:$0xff]   ;;  %v3048_v34 = vld [vmem:[%s4067_s3 + $0x20] sm:$0xff]  }
  0xd4   :  { %1908 = vmatpush1.bf16.msra.mxu1 %v2972_v35  ;;  %1868 = vmatprep.subr.bf16.mxu0 %v2977_v38  ;;  %v2996_v55 = vld [vmem:[%s4065_s1 + $0x7e8] ss:$16 sps:$4 sm:$0xff]   ;;  %v3004_v57 = vld [vmem:[%s4065_s1 + $0x7cc] ss:$16 sps:$4 sm:$0xff]   ;;  %v3060_v35 = vld [vmem:[%s4067_s3 + $0xb0] sm:$0xff]  }
  0xd5   :  { %1909 = vmatprep.subr.bf16.mxu1 %v2980_v39  ;;  %v2999_v58 = vld [vmem:[%s4065_s1 + $0x5c8] ss:$16 sps:$4 sm:$0xff]   ;;  %v3007_v60 = vld [vmem:[%s4065_s1 + $0x5ac] ss:$16 sps:$4 sm:$0xff]  }
  0xd6   :  { %v3002_v59 = vld [vmem:[%s4065_s1 + $0x7c8] ss:$16 sps:$4 sm:$0xff]   ;;  %v3010_v61 = vld [vmem:[%s4065_s1 + $0x7ac] ss:$16 sps:$4 sm:$0xff]  }
  0xd7   :  { %1869 = vmatpush1.bf16.msra.mxu0 %v2975_v40  ;;  %v3005_v62 = vld [vmem:[%s4065_s1 + $0x5a8] ss:$16 sps:$4 sm:$0xff]   ;;  %v3013_v0 = vld [vmem:[%s4065_s1 + $0x58c] ss:$16 sps:$4 sm:$0xff]  }
  0xd8   :  { %1910 = vmatpush1.bf16.msra.mxu1 %v2978_v41  ;;  %1870 = vmatprep.subr.bf16.mxu0 %v2983_v42  ;;  %v3008_v63 = vld [vmem:[%s4065_s1 + $0x7a8] ss:$16 sps:$4 sm:$0xff]   ;;  %v3016_v1 = vld [vmem:[%s4065_s1 + $0x78c] ss:$16 sps:$4 sm:$0xff]   ;;  %v3051_v42 = vld [vmem:[%s4067_s3 + $0x50] sm:$0xff]  }
  0xd9   :  { %1911 = vmatprep.subr.bf16.mxu1 %v2986_v43  ;;  %v3011_v2 = vld [vmem:[%s4065_s1 + $0x588] ss:$16 sps:$4 sm:$0xff]   ;;  %v3019_v4 = vld [vmem:[%s4065_s1 + $0x56c] ss:$16 sps:$4 sm:$0xff]   ;;  %v3063_v43 = vld [vmem:[%s4067_s3 + $0xe0] sm:$0xff]  }
  0xda   :  { %v3014_v3 = vld [vmem:[%s4065_s1 + $0x788] ss:$16 sps:$4 sm:$0xff]   ;;  %v3022_v5 = vld [vmem:[%s4065_s1 + $0x76c] ss:$16 sps:$4 sm:$0xff]  }
  0xdb   :  { %1871 = vmatpush1.bf16.msra.mxu0 %v2981_v44  ;;  %v3017_v8 = vld [vmem:[%s4065_s1 + $0x568] ss:$16 sps:$4 sm:$0xff]   ;;  %v3025_v10 = vld [vmem:[%s4065_s1 + $0x54c] ss:$16 sps:$4 sm:$0xff]   ;;  %v3052_v44 = vld [vmem:[%s4067_s3 + $0x10] sm:$0xff]  }
  0xdc   :  { %1912 = vmatpush1.bf16.msra.mxu1 %v2984_v45  ;;  %1872 = vmatprep.subr.bf16.mxu0 %v2989_v46  ;;  %v3020_v9 = vld [vmem:[%s4065_s1 + $0x768] ss:$16 sps:$4 sm:$0xff]   ;;  %v3028_v11 = vld [vmem:[%s4065_s1 + $0x74c] ss:$16 sps:$4 sm:$0xff]   ;;  %v3064_v45 = vld [vmem:[%s4067_s3 + $0xa0] sm:$0xff]  }
  0xdd   :  { %1913 = vmatprep.subr.bf16.mxu1 %v2992_v48  ;;  %v3023_v12 = vld [vmem:[%s4065_s1 + $0x548] ss:$16 sps:$4 sm:$0xff]   ;;  %v3031_v14 = vld [vmem:[%s4065_s1 + $0x52c] ss:$16 sps:$4 sm:$0xff]  }
  0xde   :  { %v3026_v13 = vld [vmem:[%s4065_s1 + $0x748] ss:$16 sps:$4 sm:$0xff]   ;;  %v3034_v15 = vld [vmem:[%s4065_s1 + $0x72c] ss:$16 sps:$4 sm:$0xff]  }
  0xdf   :  { %1873 = vmatpush1.bf16.msra.mxu0 %v2987_v49  ;;  %v3029_v18 = vld [vmem:[%s4065_s1 + $0x528] ss:$16 sps:$4 sm:$0xff]   ;;  %v3037_v20 = vld [vmem:[%s4065_s1 + $0x50c] ss:$16 sps:$4 sm:$0xff]  }
  0xe0   :  { %1914 = vmatpush1.bf16.msra.mxu1 %v2990_v50  ;;  %1874 = vmatprep.subr.bf16.mxu0 %v2995_v52  ;;  %v3032_v19 = vld [vmem:[%s4065_s1 + $0x728] ss:$16 sps:$4 sm:$0xff]   ;;  %v3040_v21 = vld [vmem:[%s4065_s1 + $0x70c] ss:$16 sps:$4 sm:$0xff]   ;;  %v3055_v52 = vld [vmem:[%s4067_s3 + $0x40] sm:$0xff]  }
  0xe1   :  { %1915 = vmatprep.subr.bf16.mxu1 %v2998_v53  ;;  %v3035_v22 = vld [vmem:[%s4065_s1 + $0x508] ss:$16 sps:$4 sm:$0xff]   ;;  %v3056_v53 = vld [vmem:[%s4067_s3] sm:$0xff]  }
  0xe2   :  { %v3038_v23 = vld [vmem:[%s4065_s1 + $0x708] ss:$16 sps:$4 sm:$0xff]  }
  0xe3   :  { %1875 = vmatpush2.bf16.msra.mxu0 %v2993_v54  ;;  %v3041_v24 = vld [vmem:[%s4067_s3 + $0x78] sm:$0xff]   ;;  %v3045_v6 = vld [vmem:[%s4067_s3 + $0x68] sm:$0xff]   ;;  %v284_v54 = vlaneseq }
  0xe4   :  { %1916 = vmatpush2.bf16.msra.mxu1 %v2996_v55  ;;  %1876 = vmatprep.subr.bf16.mxu0 %v3001_v56  ;;  %v3042_v25 = vld [vmem:[%s4067_s3 + $0x38] sm:$0xff]   ;;  %v3061_v39 = vld [vmem:[%s4067_s3 + $0xe8] sm:$0xff]  }
  0xe5   :  { %1917 = vmatprep.subr.bf16.mxu1 %v3004_v57  ;;  %v3057_v31 = vld [vmem:[%s4067_s3 + $0xf8] sm:$0xff]   ;;  %v3062_v41 = vld [vmem:[%s4067_s3 + $0xa8] sm:$0xff]   ;;  %v285_v55 = vshrl.u32 %v284_v54, 7  ;;  %v282_v57 = vld [vmem:[%s4066_s2] sm:$0xf] }
  0xe6   :  { %v3058_v32 = vld [vmem:[%s4067_s3 + $0xb8] sm:$0xff]   ;;  %v3053_v46 = vld [vmem:[%s4067_s3 + $0x48] sm:$0xff]  }
  0xe7   :  { %1877 = vmatpush2.bf16.msra.mxu0 %v2999_v58  ;;  %v3049_v38 = vld [vmem:[%s4067_s3 + $0x58] sm:$0xff]   ;;  %v3054_v49 = vld [vmem:[%s4067_s3 + $0x8] sm:$0xff]   ;;  %v286_v56 = vsub.s32 0, %v285_v55  ;;  %v290_v58 = vsub.s32 1, %v285_v55 }
  0xe8   :  { %1918 = vmatpush2.bf16.msra.mxu1 %v3002_v59  ;;  %1878 = vmatprep.subr.bf16.mxu0 %v3007_v60  ;;  %v3050_v40 = vld [vmem:[%s4067_s3 + $0x18] sm:$0xff]  }
  0xe9   :  { %1919 = vmatprep.subr.bf16.mxu1 %v3010_v61  ;;  %v3065_v48 = vld [vmem:[%s4067_s3 + $0xd8] sm:$0xff]   ;;  %v287_v59 = vrot.slane %v282_v57, %v286_v56  ;;  %v291_v60 = vrot.slane %v282_v57, %v290_v58 }
  0xea   :  { %v3066_v50 = vld [vmem:[%s4067_s3 + $0x98] sm:$0xff]  }
  0xeb   :  { %1879 = vmatpush2.bf16.msra.mxu0 %v3005_v62 }
  0xec   :  { %1920 = vmatpush2.bf16.msra.mxu1 %v3008_v63  ;;  %1880 = vmatprep.subr.bf16.mxu0 %v3013_v0  ;;  %v3067_v63 = vld [vmem:[%s4067_s3 + $0xd0] sm:$0xff]  }
  0xed   :  { %1921 = vmatprep.subr.bf16.mxu1 %v3016_v1  ;;  %v3068_v1 = vld [vmem:[%s4067_s3 + $0x90] sm:$0xff]  }
  0xef   :  { %1881 = vmatpush2.bf16.msra.mxu0 %v3011_v2 }
  0xf0   :  { %1922 = vmatpush2.bf16.msra.mxu1 %v3014_v3  ;;  %1882 = vmatprep.subr.bf16.mxu0 %v3019_v4 }
  0xf1   :  { %1923 = vmatprep.subr.bf16.mxu1 %v3022_v5 }
  0xf3   :  { %1883 = vmatpush2.bf16.msra.mxu0 %v3017_v8 }
  0xf4   :  { %1924 = vmatpush2.bf16.msra.mxu1 %v3020_v9  ;;  %1884 = vmatprep.subr.bf16.mxu0 %v3025_v10  ;;  %v3069_v10 = vld [vmem:[%s4067_s3 + $0xc8] sm:$0xff]  }
  0xf5   :  { %1925 = vmatprep.subr.bf16.mxu1 %v3028_v11 }
  0xf7   :  { %1885 = vmatpush2.bf16.msra.mxu0 %v3023_v12 }
  0xf8   :  { %1926 = vmatpush2.bf16.msra.mxu1 %v3026_v13  ;;  %1886 = vmatprep.subr.bf16.mxu0 %v3031_v14  ;;  %v3070_v13 = vld [vmem:[%s4067_s3 + $0x88] sm:$0xff]  }
  0xf9   :  { %1927 = vmatprep.subr.bf16.mxu1 %v3034_v15 }
  0xfb   :  { %1887 = vmatpush2.bf16.msra.mxu0 %v3029_v18 }
  0xfc   :  { %1928 = vmatpush2.bf16.msra.mxu1 %v3032_v19  ;;  %1888 = vmatprep.subr.bf16.mxu0 %v3037_v20 }
  0xfd   :  { %1929 = vmatprep.subr.bf16.mxu1 %v3040_v21 }
  0xff   :  { %1889 = vmatpush2.bf16.msra.mxu0 %v3035_v22  ;;  %v3071_v22 = vld [vmem:[%s4067_s3 + $0xc0] sm:$0xff]  }
 0x100   :  { %1930 = vmatpush2.bf16.msra.mxu1 %v3038_v23  ;;  %2604 = vmatprep.subr.bf16.mxu0 %v3041_v24  ;;  %v3072_v24 = vld [vmem:[%s4067_s3 + $0x80] sm:$0xff]  }
 0x101   :  { %2626 = vmatprep.subr.bf16.mxu1 %v3057_v31 }
 0x102   :  { %v3957_v27 = vpop.f32.mrf.mxu0  ;;  %1891 = vmatmul.mubr.bf16.vlgmr.msra.gmra.mxu0 %v3556_v16  ;;  %v3046_v16 = vld [vmem:[%s4067_s3 + $0x28] sm:$0xff]  }
 0x103   :  { %v3959_v28 = vpop.f32.mrf.mxu1  ;;  %1932 = vmatmul.mubr.bf16.vlgmr.msra.gmra.mxu1 %v3560_v17  ;;  %2605 = vmatpush3.bf16.msra.mxu0 %v3042_v25  ;;  %v3047_v17 = vld [vmem:[%s4067_s3 + $0x60] sm:$0xff]   ;;  %v1647_v61 = vadd.f32 %v3957_v27, %v287_v59 }
 0x104   :  { %v1648_v51 = vpop.f32.mrf.mxu0  ;;  %2606 = vmatprep.subr.bf16.mxu0 %v3043_v26  ;;  %2627 = vmatpush3.bf16.msra.mxu1 %v3058_v32 }
 0x105   :  { %v3966_v29 = vpop.f32.mrf.mxu1  ;;  %2628 = vmatprep.subr.bf16.mxu1 %v3059_v33  ;;  %v1649_v62 = vadd.f32 %v1648_v51, %v291_v60  ;;  %v1688_v0 = vadd.f32 %v3959_v28, %v1647_v61  ;;  %v2571_v60 = vld [vmem:[%s4068_s4] ss:$0 sm:$0xff] }
 0x106   :  { %v1650_v7 = vpop.f32.mrf.mxu0 }
 0x107   :  { %v1691_v30 = vpop.f32.mrf.mxu1  ;;  %2607 = vmatpush3.bf16.msra.mxu0 %v3044_v47  ;;  %v1690_v4 = vadd.f32 %v3966_v29, %v1649_v62 }
 0x108   :  { %v1651_v36 = vpop.f32.mrf.mxu0  ;;  %2608 = vmatprep.subr.bf16.mxu0 %v3045_v6  ;;  %2629 = vmatpush3.bf16.msra.mxu1 %v3060_v35 }
 0x109   :  { %v1692_v37 = vpop.f32.mrf.mxu1  ;;  %2630 = vmatprep.subr.bf16.mxu1 %v3061_v39 }
 0x10b   :  { %2609 = vmatpush3.bf16.msra.mxu0 %v3046_v16  ;;  %v294_v16 = vsub.s32 2, %v285_v55 }
 0x10c   :  { %2610 = vmatprep.subr.bf16.mxu0 %v3047_v17  ;;  %2631 = vmatpush3.bf16.msra.mxu1 %v3062_v41  ;;  %v298_v17 = vsub.s32 3, %v285_v55 }
 0x10d   :  { %2632 = vmatprep.subr.bf16.mxu1 %v3063_v43  ;;  %v295_v36 = vrot.slane %v282_v57, %v294_v16 }
 0x10e   :  { %v299_v37 = vrot.slane %v282_v57, %v298_v17 }
 0x10f   :  { %2611 = vmatpush3.bf16.msra.mxu0 %v3048_v34 }
 0x110   :  { %2612 = vmatprep.subr.bf16.mxu0 %v3049_v38  ;;  %2633 = vmatpush3.bf16.msra.mxu1 %v3064_v45 }
 0x111   :  { %2634 = vmatprep.subr.bf16.mxu1 %v3065_v48 }
 0x113   :  { %2613 = vmatpush3.bf16.msra.mxu0 %v3050_v40 }
 0x114   :  { %2614 = vmatprep.subr.bf16.mxu0 %v3051_v42  ;;  %2635 = vmatpush3.bf16.msra.mxu1 %v3066_v50 }
 0x115   :  { %2636 = vmatprep.subr.bf16.mxu1 %v3067_v63 }
 0x117   :  { %2615 = vmatpush3.bf16.msra.mxu0 %v3052_v44 }
 0x118   :  { %2616 = vmatprep.subr.bf16.mxu0 %v3053_v46  ;;  %2637 = vmatpush3.bf16.msra.mxu1 %v3068_v1 }
 0x119   :  { %2638 = vmatprep.subr.bf16.mxu1 %v3069_v10 }
 0x11b   :  { %2617 = vmatpush3.bf16.msra.mxu0 %v3054_v49 }
 0x11c   :  { %2618 = vmatprep.subr.bf16.mxu0 %v3055_v52  ;;  %2639 = vmatpush3.bf16.msra.mxu1 %v3070_v13 }
 0x11d   :  { %2640 = vmatprep.subr.bf16.mxu1 %v3071_v22 }
 0x11f   :  { %2619 = vmatpush3.bf16.msra.mxu0 %v3056_v53 }
 0x120   :  { %2641 = vmatpush3.bf16.msra.mxu1 %v3072_v24 }
 0x142   :  { %v1728_v2 = vpop.f32.mrf.mxu0 }
 0x143   :  { %v1769_v3 = vpop.f32.mrf.mxu1  ;;  %v1729_v5 = vadd.f32 %v1728_v2, %v1688_v0 }
 0x144   :  { %v1730_v8 = vpop.f32.mrf.mxu0 }
 0x145   :  { %v1771_v9 = vpop.f32.mrf.mxu1  ;;  %v1770_v11 = vadd.f32 %v1769_v3, %v1729_v5  ;;  %v1731_v12 = vadd.f32 %v1730_v8, %v1690_v4 }
 0x146   :  { %v1732_v14 = vpop.f32.mrf.mxu0 }
 0x147   :  { %v1773_v15 = vpop.f32.mrf.mxu1  ;;  %v1772_v18 = vadd.f32 %v1771_v9, %v1731_v12  ;;  %v1940_v19 = vmax.f32 %v1770_v11, 0.0 }
 0x148   :  { %v1733_v20 = vpop.f32.mrf.mxu0 }
 0x149   :  { %v1774_v21 = vpop.f32.mrf.mxu1  ;;  %v1941_v23 = vmax.f32 %v1772_v18, 0.0  ;;  %v1944_v26 = vpack.c.bf16 %v1940_v19, %v1940_v19 }
 0x14b   :  { %v1945_v25 = vpack.c.bf16 %v1941_v23, %v1941_v23 }
 0x14d   :  { %2243 = vmatprep.mubr.bf16.mxu0 %v1945_v25 }
 0x14e   :  { %2244 = vmatmul.mubr.bf16.vlgmr.msra.gmra.mxu0 %v1944_v26 }
 0x182   :  { %v1810_v27 = vpop.f32.mrf.mxu0 }
 0x183   :  { %v1851_v28 = vpop.f32.mrf.mxu1  ;;  %v1811_v31 = vadd.f32 %v1810_v27, %v295_v36 }
 0x184   :  { %v1812_v47 = vpop.f32.mrf.mxu0 }
 0x185   :  { %v1853_v51 = vpop.f32.mrf.mxu1  ;;  %v1813_v32 = vadd.f32 %v1812_v47, %v299_v37  ;;  %v1852_v33 = vadd.f32 %v1851_v28, %v1811_v31 }
 0x186   :  { %v1814_v29 = vpop.f32.mrf.mxu0 }
 0x187   :  { %v1855_v6 = vpop.f32.mrf.mxu1  ;;  %v1854_v38 = vadd.f32 %v1853_v51, %v1813_v32 }
 0x188   :  { %v1815_v7 = vpop.f32.mrf.mxu0 }
 0x189   :  { %v1856_v30 = vpop.f32.mrf.mxu1 }
 0x1c2   :  { %v1892_v34 = vpop.f32.mrf.mxu0 }
 0x1c3   :  { %v1933_v35 = vpop.f32.mrf.mxu1  ;;  %v1893_v39 = vadd.f32 %v1892_v34, %v1852_v33 }
 0x1c4   :  { %v1894_v40 = vpop.f32.mrf.mxu0 }
 0x1c5   :  { %v1935_v41 = vpop.f32.mrf.mxu1  ;;  %v1934_v42 = vadd.f32 %v1933_v35, %v1893_v39  ;;  %v1895_v43 = vadd.f32 %v1894_v40, %v1854_v38 }
 0x1c6   :  { %v1896_v44 = vpop.f32.mrf.mxu0 }
 0x1c7   :  { %v1937_v45 = vpop.f32.mrf.mxu1  ;;  %v1936_v46 = vadd.f32 %v1935_v41, %v1895_v43  ;;  %v1942_v48 = vmax.f32 %v1934_v42, 0.0 }
 0x1c8   :  { %v1897_v49 = vpop.f32.mrf.mxu0 }
 0x1c9   :  { %v1938_v50 = vpop.f32.mrf.mxu1  ;;  %v1943_v52 = vmax.f32 %v1936_v46, 0.0  ;;  %v1946_v54 = vpack.c.bf16 %v1942_v48, %v1942_v48 }
 0x1cb   :  { %v1947_v53 = vpack.c.bf16 %v1943_v52, %v1943_v52 }
 0x1cd   :  { %2283 = vmatprep.mubr.bf16.mxu1 %v1947_v53 }
 0x1ce   :  { %2284 = vmatmul.mubr.bf16.vlgmr.msra.gmra.mxu1 %v1946_v54 }
 0x20e   :  { %v2620_v55 = vpop.f32.mrf.mxu0 }
 0x210   :  { %v2621_v56 = vpop.f32.mrf.mxu0 }
 0x211   :  { %v2622_v57 = vadd.f32 %v2621_v56, %v2620_v55 }
 0x212   :  { %v2623_v58 = vpop.f32.mrf.mxu0 }
 0x213   :  { %v2246_v63 = vadd.f32 %v2622_v57, %v2571_v60 }
 0x214   :  { %v2624_v59 = vpop.f32.mrf.mxu0 }
 0x28e   :  { %v2642_v61 = vpop.f32.mrf.mxu1 }
 0x290   :  { %v2643_v62 = vpop.f32.mrf.mxu1 }
 0x291   :  { %v2644_v0 = vadd.f32 %v2643_v62, %v2642_v61 }
 0x292   :  { %v2645_v1 = vpop.f32.mrf.mxu1 }
 0x293   :  { %v2286_v2 = vadd.f32 %v2644_v0, %v2246_v63 }
 0x294   :  { %v2646_v3 = vpop.f32.mrf.mxu1 }
 0x295   :  { %2292 = vst.msk [vmem:[#allocation2] sm:$0xff] %vm2291_vm0, %v2286_v2 }
 0x296   :  { %3084 = shalt.err (!%p3081_p4)
}
 0x297   :  { %2302 = dma.vmem_to_hbm [thread:$0]  %s2300_s11, 128, %s4069_s5, [#allocation3]  }
 0x298   :  { %3093 = dma.done.wait [#allocation3], 128  }
 0x299   :  { %3094 = vsyncadd [#allocation3], 4294967168 }
 0x29a   :  { %2306 = vsyncpa [#allocation3], 1 }

</bundles_post_ra>
